<compile_context>
chip_gen: v5e
topology: v5e:2x2
jax: 0.10.0
libtpu: 0.0.40
codegen_flags: <defaults>
</compile_context>

<pallas_src>
import functools

import jax
import jax.numpy as jnp
from jax import lax
from jax.experimental import pallas as pl
from jax.experimental.pallas import tpu as pltpu

_MASK_BIAS = -1e30                       # finite "minus infinity"
_VMEM_LIMIT_BYTES = 48 * 1024 * 1024     # <= physical on all gens (v7x = 64 MiB)
_FLASH_VMEM_BUDGET = 28 * 1024 * 1024
_MATMUL_VMEM_BUDGET = 24 * 1024 * 1024


# ---------------------------------------------------------------------------
# Tiling helpers
# ---------------------------------------------------------------------------
def _tile(dim, max_tile, unit):
    """Largest divisor of `dim` that is <= max_tile and a multiple of `unit`;
    falls back to the full dim (always a legal block) only if none exists."""
    t = max_tile - (max_tile % unit)
    while t >= unit:
        if dim % t == 0:
            return t
        t -= unit
    return dim


def _matmul_tiles(M, N, K):
    tm = _tile(M, 512, 8)
    tn = _tile(N, 512, 128)
    tk = _tile(K, 1024, 128)

    def est(a, b, c):
        # double-buffered bf16 x/w blocks, f32 out block + f32 accumulator
        return 2 * a * c * 2 + 2 * c * b * 2 + 2 * a * b * 4 + a * b * 4 + 2 * b * 4

    while est(tm, tn, tk) > _MATMUL_VMEM_BUDGET and tk > 128:
        new = _tile(K, max(tk // 2, 128), 128)
        if new >= tk:
            break
        tk = new
    while est(tm, tn, tk) > _MATMUL_VMEM_BUDGET and tm > 8:
        new = _tile(M, max(tm // 2, 8), 8)
        if new >= tm:
            break
        tm = new
    return tm, tn, tk


def _flash_vmem_bytes(tq, tkv, D, H, has_kpm, has_am):
    b = 2 * tq * D * 2               # q (double-buffered, bf16)
    b += 2 * 2 * tkv * D * 2         # k, v
    b += 2 * (D * D + D) * 2         # w_unify (+ bias), VMEM-resident
    if has_kpm:
        b += 2 * tkv * 2
    if has_am:
        b += 2 * tq * tkv * 2
    b += 2 * tq * D * 4              # f32 output block
    b += tq * D * 4 + 2 * H * tq * 4  # scratch (acc, m, l)
    return b


def _flash_tiles(S1, S2, D, H, has_kpm, has_am):
    tq = _tile(S1, 512, 8)
    tkv = _tile(S2, 1024, 128)   # tkv is a lane dim of the mask blocks -> %128
    while _flash_vmem_bytes(tq, tkv, D, H, has_kpm, has_am) > _FLASH_VMEM_BUDGET \
            and tkv > 128:
        new = _tile(S2, max(tkv // 2, 128), 128)
        if new >= tkv:
            break
        tkv = new
    while _flash_vmem_bytes(tq, tkv, D, H, has_kpm, has_am) > _FLASH_VMEM_BUDGET \
            and tq > 8:
        new = _tile(S1, max(tq // 2, 8), 8)
        if new >= tq:
            break
        tq = new
    return tq, tkv


def _softmax_exp_dtype():
    """bf16 exp (fast EUP path) on v6e/v7x; v5e has no bf16 EUP -> f32."""
    try:
        kind = jax.devices()[0].device_kind.lower()
    except Exception:
        return jnp.float32
    if "v5 lite" in kind or "v5e" in kind or "v5lite" in kind:
        return jnp.float32
    return jnp.bfloat16


# ---------------------------------------------------------------------------
# Tiled matmul + bias kernel:  o = x @ w + b   (shared by both proj variants)
# ---------------------------------------------------------------------------
def _matmul_bias_kernel(x_ref, w_ref, b_ref, o_ref, acc_ref):
    k = pl.program_id(2)

    @pl.when(k == 0)
    def _init():
        acc_ref[...] = jnp.zeros(acc_ref.shape, acc_ref.dtype)

    acc_ref[...] += jnp.dot(x_ref[...], w_ref[...],
                            preferred_element_type=jnp.float32)

    @pl.when(k == pl.num_programs(2) - 1)
    def _finalize():
        o_ref[...] = (acc_ref[...] + b_ref[...].astype(jnp.float32)
                      ).astype(o_ref.dtype)


def matmul_bias(x, w, b, out_dtype=jnp.float32):
    """y = x @ w + b, pipelined + megacore-friendly tiling."""
    M, K = x.shape
    K2, N = w.shape
    assert K == K2
    tm, tn, tk = _matmul_tiles(M, N, K)
    grid = (M // tm, N // tn, K // tk)
    return pl.pallas_call(
        _matmul_bias_kernel,
        out_shape=jax.ShapeDtypeStruct((M, N), out_dtype),
        grid=grid,
        in_specs=[
            pl.BlockSpec((tm, tk), lambda i, j, k: (i, k)),
            pl.BlockSpec((tk, tn), lambda i, j, k: (k, j)),
            pl.BlockSpec((1, tn), lambda i, j, k: (0, j)),
        ],
        out_specs=pl.BlockSpec((tm, tn), lambda i, j, k: (i, j)),
        scratch_shapes=[pltpu.VMEM((tm, tn), jnp.float32)],
        compiler_params=pltpu.CompilerParams(
            dimension_semantics=("parallel", "parallel", "arbitrary"),
            vmem_limit_bytes=_VMEM_LIMIT_BYTES),
    )(x, w, b.reshape(1, N))


def qkv_proj_fused(x, w, b, out_dtype=jnp.float32):
    """Self-attention path: x [M,D] @ w [D,3D] + b, output [3, M, D]
    (q/k/v split along the leading axis so downstream slices are free)."""
    M, K = x.shape
    N3 = w.shape[1]
    D = N3 // 3
    tm, tn, tk = _matmul_tiles(M, D, K)   # tn chosen among divisors of D
    nD = D // tn
    grid = (M // tm, N3 // tn, K // tk)
    return pl.pallas_call(
        _matmul_bias_kernel,
        out_shape=jax.ShapeDtypeStruct((3, M, D), out_dtype),
        grid=grid,
        in_specs=[
            pl.BlockSpec((tm, tk), lambda i, j, k: (i, k)),
            pl.BlockSpec((tk, tn), lambda i, j, k: (k, j)),
            pl.BlockSpec((1, tn), lambda i, j, k: (0, j)),
        ],
        out_specs=pl.BlockSpec((None, tm, tn),
                               lambda i, j, k: (j // nD, i, j % nD)),
        scratch_shapes=[pltpu.VMEM((tm, tn), jnp.float32)],
        compiler_params=pltpu.CompilerParams(
            dimension_semantics=("parallel", "parallel", "arbitrary"),
            vmem_limit_bytes=_VMEM_LIMIT_BYTES),
    )(x, w, b.reshape(1, N3))


# ---------------------------------------------------------------------------
# Flash-style multi-head attention kernel with fused output (unify) projection.
#   Activations stay [B, S, D] (heads packed along lanes); heads are split
#   in-kernel with static column slices.  Grid = (batch, q-tile, kv-tile),
#   online softmax over the kv axis.  Q is pre-scaled by 1/sqrt(dim_head).
# ---------------------------------------------------------------------------
def _flash_mha_kernel(*refs, n_heads, has_kpm, has_am, exp_dtype):
    it = iter(refs)
    q_ref = next(it)
    k_ref = next(it)
    v_ref = next(it)
    wu_ref = next(it)          # [D, D]  bf16 unify weight (VMEM-resident)
    bu_ref = next(it)          # [1, D]  f32 unify bias
    kpm_ref = next(it) if has_kpm else None
    am_ref = next(it) if has_am else None
    o_ref = next(it)
    m_sc = next(it)            # [H, tq, 1] f32 running max
    l_sc = next(it)            # [H, tq, 1] f32 running denominator
    acc_sc = next(it)          # [tq, D]    f32 running (unnormalized) output

    kv_idx = pl.program_id(2)

    @pl.when(kv_idx == 0)
    def _init():
        m_sc[...] = jnp.full(m_sc.shape, -jnp.inf, m_sc.dtype)
        l_sc[...] = jnp.zeros(l_sc.shape, l_sc.dtype)
        acc_sc[...] = jnp.zeros(acc_sc.shape, acc_sc.dtype)

    q = q_ref[0]                                  # [tq, D]  bf16 (pre-scaled)
    k = k_ref[0]                                  # [tkv, D]
    v = v_ref[0]                                  # [tkv, D]

    bias = None                                   # additive f32, [*, tkv]
    if has_kpm:
        bias = kpm_ref[0].astype(jnp.float32)     # [1, tkv]
    if has_am:
        am = am_ref[...].astype(jnp.float32)      # [tq, tkv]
        bias = am if bias is None else bias + am

    tq, D = q.shape
    dh = D // n_heads

    # TODO(synk): for very large n_heads a lax.fori_loop over heads (dh%128==0)
    # would bound vreg live ranges; the static loop is fine at typical H.
    pv_parts, alpha_parts = [], []
    for h in range(n_heads):
        qh = q[:, h * dh:(h + 1) * dh]
        kh = k[:, h * dh:(h + 1) * dh]
        vh = v[:, h * dh:(h + 1) * dh]
        # q @ k^T contracting last dims directly (no transpose of k).
        s = lax.dot_general(qh, kh, (((1,), (1,)), ((), ())),
                            preferred_element_type=jnp.float32)     # [tq, tkv]
        if bias is not None:
            s = s + bias
        m_prev = m_sc[h]                                            # [tq, 1]
        m_new = jnp.maximum(m_prev, jnp.max(s, axis=-1, keepdims=True))
        alpha = jnp.exp(m_prev - m_new)                             # [tq, 1] f32
        p = jnp.exp((s - m_new).astype(exp_dtype))                  # bf16 EUP path
        l_sc[h] = alpha * l_sc[h] + jnp.sum(p, axis=-1, keepdims=True,
                                            dtype=jnp.float32)
        m_sc[h] = m_new
        pv_parts.append(jnp.dot(p.astype(v.dtype), vh,
                                preferred_element_type=jnp.float32))
        alpha_parts.append(jnp.broadcast_to(alpha, (tq, dh)))

    # Single lane-dense [tq, D] accumulator update (no sub-128-lane RMWs).
    pv_full = jnp.concatenate(pv_parts, axis=-1)
    alpha_full = jnp.concatenate(alpha_parts, axis=-1)
    acc_sc[...] = acc_sc[...] * alpha_full + pv_full

    @pl.when(kv_idx == pl.num_programs(2) - 1)
    def _finalize():
        # Exact reciprocal: runs once per q tile, cost negligible.
        inv_full = jnp.concatenate(
            [jnp.broadcast_to(1.0 / l_sc[h], (tq, dh)) for h in range(n_heads)],
            axis=-1)                                                # [tq, D] f32
        y = (acc_sc[...] * inv_full).astype(wu_ref.dtype)           # bf16 [tq, D]
        out = jnp.dot(y, wu_ref[...], preferred_element_type=jnp.float32)
        out = out + bu_ref[...].astype(jnp.float32)
        o_ref[0] = out.astype(o_ref.dtype)                          # lane-dense store


def flash_mha_unify(q_p, k_p, v_p, w_unify, b_unify, n_heads,
                    kpm_bias=None, am_bias=None,
                    out_dtype=jnp.float32, exp_dtype=jnp.bfloat16):
    """q_p: [B,S1,D] (pre-scaled); k_p/v_p: [B,S2,D]; kpm_bias: [B,1,S2] bf16;
    am_bias: [S1,S2] bf16; returns attention output already unified: [B,S1,D]."""
    B, S1, D = q_p.shape
    S2 = k_p.shape[1]
    has_kpm = kpm_bias is not None
    has_am = am_bias is not None
    tq, tkv = _flash_tiles(S1, S2, D, n_heads, has_kpm, has_am)
    grid = (B, S1 // tq, S2 // tkv)

    in_specs = [
        pl.BlockSpec((1, tq, D), lambda b, qi, kv: (b, qi, 0)),
        pl.BlockSpec((1, tkv, D), lambda b, qi, kv: (b, kv, 0)),
        pl.BlockSpec((1, tkv, D), lambda b, qi, kv: (b, kv, 0)),
        pl.BlockSpec((D, D), lambda b, qi, kv: (0, 0)),     # w_unify (resident)
        pl.BlockSpec((1, D), lambda b, qi, kv: (0, 0)),     # b_unify (resident)
    ]
    args = [q_p, k_p, v_p, w_unify, b_unify.reshape(1, D)]
    if has_kpm:
        in_specs.append(pl.BlockSpec((1, 1, tkv), lambda b, qi, kv: (b, 0, kv)))
        args.append(kpm_bias)
    if has_am:
        in_specs.append(pl.BlockSpec((tq, tkv), lambda b, qi, kv: (qi, kv)))
        args.append(am_bias)

    kernel = functools.partial(
        _flash_mha_kernel, n_heads=n_heads, has_kpm=has_kpm, has_am=has_am,
        exp_dtype=exp_dtype)

    return pl.pallas_call(
        kernel,
        out_shape=jax.ShapeDtypeStruct((B, S1, D), out_dtype),
        grid=grid,
        in_specs=in_specs,
        out_specs=pl.BlockSpec((1, tq, D), lambda b, qi, kv: (b, qi, 0)),
        scratch_shapes=[
            pltpu.VMEM((n_heads, tq, 1), jnp.float32),   # running max
            pltpu.VMEM((n_heads, tq, 1), jnp.float32),   # running denominator
            pltpu.VMEM((tq, D), jnp.float32),            # running output
        ],
        compiler_params=pltpu.CompilerParams(
            dimension_semantics=("parallel", "parallel", "arbitrary"),
            vmem_limit_bytes=_VMEM_LIMIT_BYTES),
    )(*args)


# ---------------------------------------------------------------------------
# MultiheadAttention forward (glue in plain JAX, hot path in Pallas)
# ---------------------------------------------------------------------------
def init_params(key, dim):
    """nn.Linear-shaped params; weights stored [in, out] so y = x @ W + b."""
    k1, k2, k3, k4 = jax.random.split(key, 4)
    bound = 1.0 / jnp.sqrt(jnp.float32(dim))
    return {
        "w_qkv": jax.random.uniform(k1, (dim, 3 * dim), jnp.float32, -bound, bound),
        "b_qkv": jax.random.uniform(k2, (3 * dim,), jnp.float32, -bound, bound),
        "w_unify": jax.random.uniform(k3, (dim, dim), jnp.float32, -bound, bound),
        "b_unify": jax.random.uniform(k4, (dim,), jnp.float32, -bound, bound),
    }


@functools.partial(jax.jit, static_argnames=("n_heads", "fused_qkv",
                                             "compute_dtype", "exp_dtype"))
def _mha_impl(params, q, k, v, key_padding_mask, attn_mask, *,
              n_heads, fused_qkv, compute_dtype, exp_dtype):
    # TODO(synk): dropout is only constructed when rate > 0 in the reference
    # module; with dropout=0.0 it is the identity and is omitted here.
    B, S1, D = q.shape
    S2 = k.shape[1]
    assert D % n_heads == 0
    dh = D // n_heads
    scale = float(dh) ** -0.5
    cd = compute_dtype

    w_qkv = params["w_qkv"]          # f32 [D, 3D], columns = (q | k | v)
    b_qkv = params["b_qkv"]          # f32 [3D]

    if fused_qkv:
        # Self-attention: one fused [D,3D] projection (activation read once);
        # fold the softmax scale into the q-third of the weight/bias (exact).
        col_scale = jnp.concatenate(
            [jnp.full((D,), scale, jnp.float32), jnp.ones((2 * D,), jnp.float32)])
        w_f = (w_qkv * col_scale[None, :]).astype(cd)
        b_f = b_qkv * col_scale
        qkv_p = qkv_proj_fused(q.reshape(B * S1, D).astype(cd), w_f, b_f,
                               out_dtype=cd)                      # [3, B*S1, D]
        q_p = qkv_p[0].reshape(B, S1, D)
        k_p = qkv_p[1].reshape(B, S1, D)
        v_p = qkv_p[2].reshape(B, S1, D)
    else:
        # Cross-attention: project each input only against its own D-wide third
        # of the fused qkv weight (identical numerics, 3x fewer FLOPs/writes).
        q_p = matmul_bias(q.reshape(B * S1, D).astype(cd),
                          (w_qkv[:, :D] * scale).astype(cd),
                          b_qkv[:D] * scale, out_dtype=cd).reshape(B, S1, D)
        k_p = matmul_bias(k.reshape(B * S2, D).astype(cd),
                          w_qkv[:, D:2 * D].astype(cd),
                          b_qkv[D:2 * D], out_dtype=cd).reshape(B, S2, D)
        v_p = matmul_bias(v.reshape(B * S2, D).astype(cd),
                          w_qkv[:, 2 * D:].astype(cd),
                          b_qkv[2 * D:], out_dtype=cd).reshape(B, S2, D)

    # Small additive mask biases in bf16 (never the full [B,H,S1,S2] tensor).
    kpm_bias = None
    if key_padding_mask is not None:
        kpm_bias = jnp.where(key_padding_mask, _MASK_BIAS, 0.0
                             ).astype(jnp.bfloat16)[:, None, :]       # [B,1,S2]
    am_bias = None
    if attn_mask is not None:
        am_bias = jnp.where(attn_mask, _MASK_BIAS, 0.0).astype(jnp.bfloat16)

    # Flash attention with the unify projection fused into its finalize.
    return flash_mha_unify(q_p, k_p, v_p,
                           params["w_unify"].astype(cd), params["b_unify"],
                           n_heads, kpm_bias, am_bias,
                           out_dtype=jnp.float32, exp_dtype=exp_dtype)


def multihead_attention(params, q, k, v, n_heads, key_padding_mask=None,
                        attn_mask=None, compute_dtype=jnp.bfloat16):
    fused_qkv = (q is k) and (k is v)        # self-attention fast path
    return _mha_impl(params, q, k, v, key_padding_mask, attn_mask,
                     n_heads=n_heads, fused_qkv=fused_qkv,
                     compute_dtype=compute_dtype,
                     exp_dtype=_softmax_exp_dtype())


# ---------------------------------------------------------------------------
# Pure-JAX reference (same bf16-operand / f32-accumulate policy) for checks
# ---------------------------------------------------------------------------
def reference_mha(params, q, k, v, n_heads, key_padding_mask=None,
                  attn_mask=None, compute_dtype=jnp.bfloat16):
    B, S1, D = q.shape
    S2 = k.shape[1]
    dh = D // n_heads
    cd = compute_dtype

    def proj(x, w, b):
        y = jnp.dot(x.astype(cd), w.astype(cd),
                    preferred_element_type=jnp.float32) + b
        return y.astype(cd)

    q_p = proj(q, params["w_qkv"][:, 0:D], params["b_qkv"][0:D])
    k_p = proj(k, params["w_qkv"][:, D:2 * D], params["b_qkv"][D:2 * D])
    v_p = proj(v, params["w_qkv"][:, 2 * D:], params["b_qkv"][2 * D:])

    qh = q_p.reshape(B, S1, n_heads, dh)
    kh = k_p.reshape(B, S2, n_heads, dh)
    vh = v_p.reshape(B, S2, n_heads, dh)

    s = jnp.einsum("bqhd,bkhd->bhqk", qh, kh,
                   preferred_element_type=jnp.float32) / jnp.sqrt(jnp.float32(dh))
    if key_padding_mask is not None:
        s = s + jnp.where(key_padding_mask, _MASK_BIAS, 0.0)[:, None, None, :]
    if attn_mask is not None:
        s = s + jnp.where(attn_mask, _MASK_BIAS, 0.0)[None, None, :, :]
    p = jax.nn.softmax(s, axis=-1)
    y = jnp.einsum("bhqk,bkhd->bqhd", p.astype(cd), vh,
                   preferred_element_type=jnp.float32)
    y = y.astype(cd).reshape(B, S1, D)
    return jnp.dot(y, params["w_unify"].astype(cd),
                   preferred_element_type=jnp.float32) + params["b_unify"]


if __name__ == "__main__":
    B, S1, S2 = 2, 8, 8
    D, H = 32, 4            # dim=32, n_heads=4, dim_head=8

    key = jax.random.PRNGKey(0)
    kp, kq, kk, kv_ = jax.random.split(key, 4)
    params = init_params(kp, D)

    q = jax.random.normal(kq, (B, S1, D), jnp.float32)
    k = jax.random.normal(kk, (B, S2, D), jnp.float32)
    v = jax.random.normal(kv_, (B, S2, D), jnp.float32)

    # ---- cross-attention, no mask ----
    out = multihead_attention(params, q, k, v, H)
    out = jax.block_until_ready(out)
    ref = reference_mha(params, q, k, v, H)
    assert out.shape == (B, S1, D)
    assert jnp.allclose(out, ref, atol=2e-2, rtol=2e-2), "mismatch (no mask)"

    # ---- causal attn_mask + key_padding_mask ----
    attn_mask = jnp.triu(jnp.ones((S1, S2), dtype=bool), k=1)
    key_padding_mask = jnp.zeros((B, S2), dtype=bool).at[:, -2:].set(True)
    out_m = multihead_attention(params, q, k, v, H,
                                key_padding_mask=key_padding_mask,
                                attn_mask=attn_mask)
    out_m = jax.block_until_ready(out_m)
    ref_m = reference_mha(params, q, k, v, H,
                          key_padding_mask=key_padding_mask,
                          attn_mask=attn_mask)
    assert jnp.allclose(out_m, ref_m, atol=2e-2, rtol=2e-2), "mismatch (masked)"

    # ---- self-attention (fused [D,3D] projection path) ----
    out_s = multihead_attention(params, q, q, q, H)
    out_s = jax.block_until_ready(out_s)
    ref_s = reference_mha(params, q, q, q, H)
    assert jnp.allclose(out_s, ref_s, atol=2e-2, rtol=2e-2), "mismatch (self-attn)"

    print("KERNEL_OK")
</pallas_src>

<mosaic_0001>
module attributes {stable_mosaic.version = 11 : i64} {
  func.func @_matmul_bias_kernel(%arg0: i32, %arg1: i32, %arg2: i32, %arg3: memref<16x32xbf16, #tpu.memory_space<vmem>>, %arg4: memref<32x32xbf16, #tpu.memory_space<vmem>>, %arg5: memref<1x32xf32, #tpu.memory_space<vmem>>, %arg6: memref<16x32xbf16, #tpu.memory_space<vmem>>, %arg7: memref<16x32xf32, #tpu.memory_space<vmem>>) attributes {dimension_semantics = [#tpu.dimension_semantics<parallel>, #tpu.dimension_semantics<parallel>, #tpu.dimension_semantics<arbitrary>], iteration_bounds = array<i64: 1, 1, 1>, scalar_prefetch = 0 : i64, scratch_operands = 1 : i64, tpu.core_type = #tpu.core_type<tc>, window_params = [{transform_indices = @transform_0, window_bounds = array<i64: 16, 32>}, {transform_indices = @transform_1, window_bounds = array<i64: 32, 32>}, {transform_indices = @transform_2, window_bounds = array<i64: 1, 32>}, {transform_indices = @transform_3, window_bounds = array<i64: 16, 32>}]} {
    %c0_i32 = arith.constant 0 : i32
    %0 = arith.cmpi eq, %arg2, %c0_i32 : i32
    %1 = arith.extui %0 : i1 to i32
    %c0_i32_0 = arith.constant 0 : i32
    %2 = arith.cmpi ne, %1, %c0_i32_0 : i32
    scf.if %2 {
      %cst_10 = arith.constant 0.000000e+00 : f32
      %12 = vector.broadcast %cst_10 : f32 to vector<16x32xf32>
      %c0_11 = arith.constant 0 : index
      %c0_12 = arith.constant 0 : index
      %13 = vector.load %arg7[%c0_11, %c0_12] : memref<16x32xf32, #tpu.memory_space<vmem>>, vector<16x32xf32>
      tpu.vector_store %arg7[%c0_11, %c0_12], %12 {strides = array<i32>} : memref<16x32xf32, #tpu.memory_space<vmem>>, vector<16x32xf32>,
    } else {
    }
    %c0 = arith.constant 0 : index
    %c0_1 = arith.constant 0 : index
    %3 = vector.load %arg7[%c0, %c0_1] : memref<16x32xf32, #tpu.memory_space<vmem>>, vector<16x32xf32>
    %c0_2 = arith.constant 0 : index
    %c0_3 = arith.constant 0 : index
    %4 = vector.load %arg3[%c0_2, %c0_3] : memref<16x32xbf16, #tpu.memory_space<vmem>>, vector<16x32xbf16>
    %c0_4 = arith.constant 0 : index
    %c0_5 = arith.constant 0 : index
    %5 = vector.load %arg4[%c0_4, %c0_5] : memref<32x32xbf16, #tpu.memory_space<vmem>>, vector<32x32xbf16>
    %cst = arith.constant dense<0.000000e+00> : vector<16x32xf32>
    %6 = tpu.matmul %4, %5, %cst {dimension_numbers = #tpu.dot_dimension_numbers<[1], [0], [0], [1], [0, 0, 1, 1], [], []>} : vector<16x32xbf16>, vector<32x32xbf16>, vector<16x32xf32> -> vector<16x32xf32>
    %7 = arith.addf %3, %6 : vector<16x32xf32>
    %c0_6 = arith.constant 0 : index
    %c0_7 = arith.constant 0 : index
    %8 = vector.load %arg7[%c0_6, %c0_7] : memref<16x32xf32, #tpu.memory_space<vmem>>, vector<16x32xf32>
    tpu.vector_store %arg7[%c0_6, %c0_7], %7 {strides = array<i32>} : memref<16x32xf32, #tpu.memory_space<vmem>>, vector<16x32xf32>,
    %c0_i32_8 = arith.constant 0 : i32
    %9 = arith.cmpi eq, %arg2, %c0_i32_8 : i32
    %10 = arith.extui %9 : i1 to i32
    %c0_i32_9 = arith.constant 0 : i32
    %11 = arith.cmpi ne, %10, %c0_i32_9 : i32
    scf.if %11 {
      %c0_10 = arith.constant 0 : index
      %c0_11 = arith.constant 0 : index
      %12 = vector.load %arg7[%c0_10, %c0_11] : memref<16x32xf32, #tpu.memory_space<vmem>>, vector<16x32xf32>
      %c0_12 = arith.constant 0 : index
      %c0_13 = arith.constant 0 : index
      %13 = vector.load %arg5[%c0_12, %c0_13] : memref<1x32xf32, #tpu.memory_space<vmem>>, vector<1x32xf32>
      %14 = vector.broadcast %13 : vector<1x32xf32> to vector<16x32xf32>
      %15 = arith.addf %12, %14 : vector<16x32xf32>
      %16 = arith.truncf %15 : vector<16x32xf32> to vector<16x32xbf16>
      %c0_14 = arith.constant 0 : index
      %c0_15 = arith.constant 0 : index
      %17 = vector.load %arg6[%c0_14, %c0_15] : memref<16x32xbf16, #tpu.memory_space<vmem>>, vector<16x32xbf16>
      tpu.vector_store %arg6[%c0_14, %c0_15], %16 {strides = array<i32>} : memref<16x32xbf16, #tpu.memory_space<vmem>>, vector<16x32xbf16>,
    } else {
    }
    return
  }
  func.func @transform_0(%arg0: i32, %arg1: i32, %arg2: i32) -> (i32, i32) {
    %c0_i32 = arith.constant 0 : i32
    return %arg0, %arg2 : i32, i32
  }
  func.func @transform_1(%arg0: i32, %arg1: i32, %arg2: i32) -> (i32, i32) {
    %c0_i32 = arith.constant 0 : i32
    return %arg2, %arg1 : i32, i32
  }
  func.func @transform_2(%arg0: i32, %arg1: i32, %arg2: i32) -> (i32, i32) {
    %c0_i32 = arith.constant 0 : i32
    %c0_i32_0 = arith.constant 0 : i32
    return %c0_i32, %arg1 : i32, i32
  }
  func.func @transform_3(%arg0: i32, %arg1: i32, %arg2: i32) -> (i32, i32) {
    %c0_i32 = arith.constant 0 : i32
    return %arg0, %arg1 : i32, i32
  }
}

module attributes {stable_mosaic.version = 11 : i64} {
  func.func @_flash_mha_kernel(%arg0: i32, %arg1: i32, %arg2: i32, %arg3: memref<1x8x32xbf16, #tpu.memory_space<vmem>>, %arg4: memref<1x8x32xbf16, #tpu.memory_space<vmem>>, %arg5: memref<1x8x32xbf16, #tpu.memory_space<vmem>>, %arg6: memref<32x32xbf16, #tpu.memory_space<vmem>>, %arg7: memref<1x32xf32, #tpu.memory_space<vmem>>, %arg8: memref<1x8x32xf32, #tpu.memory_space<vmem>>, %arg9: memref<4x8x1xf32, #tpu.memory_space<vmem>>, %arg10: memref<4x8x1xf32, #tpu.memory_space<vmem>>, %arg11: memref<8x32xf32, #tpu.memory_space<vmem>>) attributes {dimension_semantics = [#tpu.dimension_semantics<parallel>, #tpu.dimension_semantics<parallel>, #tpu.dimension_semantics<arbitrary>], iteration_bounds = array<i64: 2, 1, 1>, scalar_prefetch = 0 : i64, scratch_operands = 3 : i64, tpu.core_type = #tpu.core_type<tc>, window_params = [{transform_indices = @transform_0, window_bounds = array<i64: 1, 8, 32>}, {transform_indices = @transform_1, window_bounds = array<i64: 1, 8, 32>}, {transform_indices = @transform_2, window_bounds = array<i64: 1, 8, 32>}, {pipeline_mode = #tpu.pipeline_mode<synchronous>, transform_indices = @transform_3, window_bounds = array<i64: 32, 32>}, {pipeline_mode = #tpu.pipeline_mode<synchronous>, transform_indices = @transform_4, window_bounds = array<i64: 1, 32>}, {transform_indices = @transform_5, window_bounds = array<i64: 1, 8, 32>}]} {
    %c0_i32 = arith.constant 0 : i32
    %0 = arith.cmpi eq, %arg2, %c0_i32 : i32
    %1 = arith.extui %0 : i1 to i32
    %c0_i32_0 = arith.constant 0 : i32
    %2 = arith.cmpi ne, %1, %c0_i32_0 : i32
    scf.if %2 {
      %cst_75 = arith.constant 0xFF800000 : f32
      %142 = vector.broadcast %cst_75 : f32 to vector<4x8x1xf32>
      %c0_76 = arith.constant 0 : index
      %c0_77 = arith.constant 0 : index
      %c0_78 = arith.constant 0 : index
      %143 = vector.load %arg9[%c0_76, %c0_77, %c0_78] : memref<4x8x1xf32, #tpu.memory_space<vmem>>, vector<4x8x1xf32>
      tpu.vector_store %arg9[%c0_76, %c0_77, %c0_78], %142 {strides = array<i32>} : memref<4x8x1xf32, #tpu.memory_space<vmem>>, vector<4x8x1xf32>,
      %cst_79 = arith.constant 0.000000e+00 : f32
      %144 = vector.broadcast %cst_79 : f32 to vector<4x8x1xf32>
      %c0_80 = arith.constant 0 : index
      %c0_81 = arith.constant 0 : index
      %c0_82 = arith.constant 0 : index
      %145 = vector.load %arg10[%c0_80, %c0_81, %c0_82] : memref<4x8x1xf32, #tpu.memory_space<vmem>>, vector<4x8x1xf32>
      tpu.vector_store %arg10[%c0_80, %c0_81, %c0_82], %144 {strides = array<i32>} : memref<4x8x1xf32, #tpu.memory_space<vmem>>, vector<4x8x1xf32>,
      %cst_83 = arith.constant 0.000000e+00 : f32
      %146 = vector.broadcast %cst_83 : f32 to vector<8x32xf32>
      %c0_84 = arith.constant 0 : index
      %c0_85 = arith.constant 0 : index
      %147 = vector.load %arg11[%c0_84, %c0_85] : memref<8x32xf32, #tpu.memory_space<vmem>>, vector<8x32xf32>
      tpu.vector_store %arg11[%c0_84, %c0_85], %146 {strides = array<i32>} : memref<8x32xf32, #tpu.memory_space<vmem>>, vector<8x32xf32>,
    } else {
    }
    %c0 = arith.constant 0 : index
    %c0_1 = arith.constant 0 : index
    %c0_2 = arith.constant 0 : index
    %3 = vector.load %arg3[%c0, %c0_1, %c0_2] : memref<1x8x32xbf16, #tpu.memory_space<vmem>>, vector<1x8x32xbf16>
    %4 = vector.shape_cast %3 : vector<1x8x32xbf16> to vector<8x32xbf16>
    %c0_3 = arith.constant 0 : index
    %c0_4 = arith.constant 0 : index
    %c0_5 = arith.constant 0 : index
    %5 = vector.load %arg4[%c0_3, %c0_4, %c0_5] : memref<1x8x32xbf16, #tpu.memory_space<vmem>>, vector<1x8x32xbf16>
    %6 = vector.shape_cast %5 : vector<1x8x32xbf16> to vector<8x32xbf16>
    %c0_6 = arith.constant 0 : index
    %c0_7 = arith.constant 0 : index
    %c0_8 = arith.constant 0 : index
    %7 = vector.load %arg5[%c0_6, %c0_7, %c0_8] : memref<1x8x32xbf16, #tpu.memory_space<vmem>>, vector<1x8x32xbf16>
    %8 = vector.shape_cast %7 : vector<1x8x32xbf16> to vector<8x32xbf16>
    %9 = vector.extract_strided_slice %4 {offsets = [0, 0], sizes = [8, 8], strides = [1, 1]} : vector<8x32xbf16> to vector<8x8xbf16>
    %10 = vector.extract_strided_slice %6 {offsets = [0, 0], sizes = [8, 8], strides = [1, 1]} : vector<8x32xbf16> to vector<8x8xbf16>
    %11 = vector.extract_strided_slice %8 {offsets = [0, 0], sizes = [8, 8], strides = [1, 1]} : vector<8x32xbf16> to vector<8x8xbf16>
    %cst = arith.constant dense<0.000000e+00> : vector<8x8xf32>
    %12 = tpu.matmul %9, %10, %cst {dimension_numbers = #tpu.dot_dimension_numbers<[1], [1], [0], [0], [0, 0, 1, 0], [], []>} : vector<8x8xbf16>, vector<8x8xbf16>, vector<8x8xf32> -> vector<8x8xf32>
    %c0_9 = arith.constant 0 : index
    %c0_10 = arith.constant 0 : index
    %c0_11 = arith.constant 0 : index
    %13 = vector.load %arg9[%c0_9, %c0_10, %c0_11] : memref<4x8x1xf32, #tpu.memory_space<vmem>>, vector<1x8x1xf32>
    %14 = vector.shape_cast %13 : vector<1x8x1xf32> to vector<8x1xf32>
    %cst_12 = arith.constant dense<0xFF800000> : vector<8xf32>
    %15 = vector.multi_reduction <maximumf>, %12, %cst_12 [1] : vector<8x8xf32> to vector<8xf32>
    %16 = vector.shape_cast %15 : vector<8xf32> to vector<8x1xf32>
    %17 = arith.maximumf %14, %16 : vector<8x1xf32>
    %18 = arith.subf %14, %17 : vector<8x1xf32>
    %19 = math.exp %18 : vector<8x1xf32>
    %20 = vector.broadcast %17 : vector<8x1xf32> to vector<8x8xf32>
    %21 = arith.subf %12, %20 : vector<8x8xf32>
    %22 = arith.truncf %21 : vector<8x8xf32> to vector<8x8xbf16>
    %23 = math.exp %22 : vector<8x8xbf16>
    %c0_13 = arith.constant 0 : index
    %c0_14 = arith.constant 0 : index
    %c0_15 = arith.constant 0 : index
    %24 = vector.load %arg10[%c0_13, %c0_14, %c0_15] : memref<4x8x1xf32, #tpu.memory_space<vmem>>, vector<1x8x1xf32>
    %25 = vector.shape_cast %24 : vector<1x8x1xf32> to vector<8x1xf32>
    %26 = arith.mulf %19, %25 : vector<8x1xf32>
    %27 = arith.extf %23 : vector<8x8xbf16> to vector<8x8xf32>
    %cst_16 = arith.constant dense<0.000000e+00> : vector<8xf32>
    %28 = vector.multi_reduction <add>, %27, %cst_16 [1] : vector<8x8xf32> to vector<8xf32>
    %29 = vector.shape_cast %28 : vector<8xf32> to vector<8x1xf32>
    %30 = arith.addf %26, %29 : vector<8x1xf32>
    %c0_17 = arith.constant 0 : index
    %c0_18 = arith.constant 0 : index
    %c0_19 = arith.constant 0 : index
    %31 = vector.load %arg10[%c0_17, %c0_18, %c0_19] : memref<4x8x1xf32, #tpu.memory_space<vmem>>, vector<1x8x1xf32>
    %32 = vector.shape_cast %31 : vector<1x8x1xf32> to vector<8x1xf32>
    %33 = vector.shape_cast %30 : vector<8x1xf32> to vector<1x8x1xf32>
    tpu.vector_store %arg10[%c0_17, %c0_18, %c0_19], %33 {strides = array<i32>} : memref<4x8x1xf32, #tpu.memory_space<vmem>>, vector<1x8x1xf32>,
    %c0_20 = arith.constant 0 : index
    %c0_21 = arith.constant 0 : index
    %c0_22 = arith.constant 0 : index
    %34 = vector.load %arg9[%c0_20, %c0_21, %c0_22] : memref<4x8x1xf32, #tpu.memory_space<vmem>>, vector<1x8x1xf32>
    %35 = vector.shape_cast %34 : vector<1x8x1xf32> to vector<8x1xf32>
    %36 = vector.shape_cast %17 : vector<8x1xf32> to vector<1x8x1xf32>
    tpu.vector_store %arg9[%c0_20, %c0_21, %c0_22], %36 {strides = array<i32>} : memref<4x8x1xf32, #tpu.memory_space<vmem>>, vector<1x8x1xf32>,
    %cst_23 = arith.constant dense<0.000000e+00> : vector<8x8xf32>
    %37 = tpu.matmul %23, %11, %cst_23 {dimension_numbers = #tpu.dot_dimension_numbers<[1], [0], [0], [1], [0, 0, 1, 1], [], []>} : vector<8x8xbf16>, vector<8x8xbf16>, vector<8x8xf32> -> vector<8x8xf32>
    %38 = vector.shape_cast %19 : vector<8x1xf32> to vector<8x1xf32>
    %39 = vector.broadcast %38 : vector<8x1xf32> to vector<8x8xf32>
    %40 = vector.extract_strided_slice %4 {offsets = [0, 8], sizes = [8, 8], strides = [1, 1]} : vector<8x32xbf16> to vector<8x8xbf16>
    %41 = vector.extract_strided_slice %6 {offsets = [0, 8], sizes = [8, 8], strides = [1, 1]} : vector<8x32xbf16> to vector<8x8xbf16>
    %42 = vector.extract_strided_slice %8 {offsets = [0, 8], sizes = [8, 8], strides = [1, 1]} : vector<8x32xbf16> to vector<8x8xbf16>
    %cst_24 = arith.constant dense<0.000000e+00> : vector<8x8xf32>
    %43 = tpu.matmul %40, %41, %cst_24 {dimension_numbers = #tpu.dot_dimension_numbers<[1], [1], [0], [0], [0, 0, 1, 0], [], []>} : vector<8x8xbf16>, vector<8x8xbf16>, vector<8x8xf32> -> vector<8x8xf32>
    %c1 = arith.constant 1 : index
    %c0_25 = arith.constant 0 : index
    %c0_26 = arith.constant 0 : index
    %44 = vector.load %arg9[%c1, %c0_25, %c0_26] : memref<4x8x1xf32, #tpu.memory_space<vmem>>, vector<1x8x1xf32>
    %45 = vector.shape_cast %44 : vector<1x8x1xf32> to vector<8x1xf32>
    %cst_27 = arith.constant dense<0xFF800000> : vector<8xf32>
    %46 = vector.multi_reduction <maximumf>, %43, %cst_27 [1] : vector<8x8xf32> to vector<8xf32>
    %47 = vector.shape_cast %46 : vector<8xf32> to vector<8x1xf32>
    %48 = arith.maximumf %45, %47 : vector<8x1xf32>
    %49 = arith.subf %45, %48 : vector<8x1xf32>
    %50 = math.exp %49 : vector<8x1xf32>
    %51 = vector.broadcast %48 : vector<8x1xf32> to vector<8x8xf32>
    %52 = arith.subf %43, %51 : vector<8x8xf32>
    %53 = arith.truncf %52 : vector<8x8xf32> to vector<8x8xbf16>
    %54 = math.exp %53 : vector<8x8xbf16>
    %c1_28 = arith.constant 1 : index
    %c0_29 = arith.constant 0 : index
    %c0_30 = arith.constant 0 : index
    %55 = vector.load %arg10[%c1_28, %c0_29, %c0_30] : memref<4x8x1xf32, #tpu.memory_space<vmem>>, vector<1x8x1xf32>
    %56 = vector.shape_cast %55 : vector<1x8x1xf32> to vector<8x1xf32>
    %57 = arith.mulf %50, %56 : vector<8x1xf32>
    %58 = arith.extf %54 : vector<8x8xbf16> to vector<8x8xf32>
    %cst_31 = arith.constant dense<0.000000e+00> : vector<8xf32>
    %59 = vector.multi_reduction <add>, %58, %cst_31 [1] : vector<8x8xf32> to vector<8xf32>
    %60 = vector.shape_cast %59 : vector<8xf32> to vector<8x1xf32>
    %61 = arith.addf %57, %60 : vector<8x1xf32>
    %c1_32 = arith.constant 1 : index
    %c0_33 = arith.constant 0 : index
    %c0_34 = arith.constant 0 : index
    %62 = vector.load %arg10[%c1_32, %c0_33, %c0_34] : memref<4x8x1xf32, #tpu.memory_space<vmem>>, vector<1x8x1xf32>
    %63 = vector.shape_cast %62 : vector<1x8x1xf32> to vector<8x1xf32>
    %64 = vector.shape_cast %61 : vector<8x1xf32> to vector<1x8x1xf32>
    tpu.vector_store %arg10[%c1_32, %c0_33, %c0_34], %64 {strides = array<i32>} : memref<4x8x1xf32, #tpu.memory_space<vmem>>, vector<1x8x1xf32>,
    %c1_35 = arith.constant 1 : index
    %c0_36 = arith.constant 0 : index
    %c0_37 = arith.constant 0 : index
    %65 = vector.load %arg9[%c1_35, %c0_36, %c0_37] : memref<4x8x1xf32, #tpu.memory_space<vmem>>, vector<1x8x1xf32>
    %66 = vector.shape_cast %65 : vector<1x8x1xf32> to vector<8x1xf32>
    %67 = vector.shape_cast %48 : vector<8x1xf32> to vector<1x8x1xf32>
    tpu.vector_store %arg9[%c1_35, %c0_36, %c0_37], %67 {strides = array<i32>} : memref<4x8x1xf32, #tpu.memory_space<vmem>>, vector<1x8x1xf32>,
    %cst_38 = arith.constant dense<0.000000e+00> : vector<8x8xf32>
    %68 = tpu.matmul %54, %42, %cst_38 {dimension_numbers = #tpu.dot_dimension_numbers<[1], [0], [0], [1], [0, 0, 1, 1], [], []>} : vector<8x8xbf16>, vector<8x8xbf16>, vector<8x8xf32> -> vector<8x8xf32>
    %69 = vector.shape_cast %50 : vector<8x1xf32> to vector<8x1xf32>
    %70 = vector.broadcast %69 : vector<8x1xf32> to vector<8x8xf32>
    %71 = vector.extract_strided_slice %4 {offsets = [0, 16], sizes = [8, 8], strides = [1, 1]} : vector<8x32xbf16> to vector<8x8xbf16>
    %72 = vector.extract_strided_slice %6 {offsets = [0, 16], sizes = [8, 8], strides = [1, 1]} : vector<8x32xbf16> to vector<8x8xbf16>
    %73 = vector.extract_strided_slice %8 {offsets = [0, 16], sizes = [8, 8], strides = [1, 1]} : vector<8x32xbf16> to vector<8x8xbf16>
    %cst_39 = arith.constant dense<0.000000e+00> : vector<8x8xf32>
    %74 = tpu.matmul %71, %72, %cst_39 {dimension_numbers = #tpu.dot_dimension_numbers<[1], [1], [0], [0], [0, 0, 1, 0], [], []>} : vector<8x8xbf16>, vector<8x8xbf16>, vector<8x8xf32> -> vector<8x8xf32>
    %c2 = arith.constant 2 : index
    %c0_40 = arith.constant 0 : index
    %c0_41 = arith.constant 0 : index
    %75 = vector.load %arg9[%c2, %c0_40, %c0_41] : memref<4x8x1xf32, #tpu.memory_space<vmem>>, vector<1x8x1xf32>
    %76 = vector.shape_cast %75 : vector<1x8x1xf32> to vector<8x1xf32>
    %cst_42 = arith.constant dense<0xFF800000> : vector<8xf32>
    %77 = vector.multi_reduction <maximumf>, %74, %cst_42 [1] : vector<8x8xf32> to vector<8xf32>
    %78 = vector.shape_cast %77 : vector<8xf32> to vector<8x1xf32>
    %79 = arith.maximumf %76, %78 : vector<8x1xf32>
    %80 = arith.subf %76, %79 : vector<8x1xf32>
    %81 = math.exp %80 : vector<8x1xf32>
    %82 = vector.broadcast %79 : vector<8x1xf32> to vector<8x8xf32>
    %83 = arith.subf %74, %82 : vector<8x8xf32>
    %84 = arith.truncf %83 : vector<8x8xf32> to vector<8x8xbf16>
    %85 = math.exp %84 : vector<8x8xbf16>
    %c2_43 = arith.constant 2 : index
    %c0_44 = arith.constant 0 : index
    %c0_45 = arith.constant 0 : index
    %86 = vector.load %arg10[%c2_43, %c0_44, %c0_45] : memref<4x8x1xf32, #tpu.memory_space<vmem>>, vector<1x8x1xf32>
    %87 = vector.shape_cast %86 : vector<1x8x1xf32> to vector<8x1xf32>
    %88 = arith.mulf %81, %87 : vector<8x1xf32>
    %89 = arith.extf %85 : vector<8x8xbf16> to vector<8x8xf32>
    %cst_46 = arith.constant dense<0.000000e+00> : vector<8xf32>
    %90 = vector.multi_reduction <add>, %89, %cst_46 [1] : vector<8x8xf32> to vector<8xf32>
    %91 = vector.shape_cast %90 : vector<8xf32> to vector<8x1xf32>
    %92 = arith.addf %88, %91 : vector<8x1xf32>
    %c2_47 = arith.constant 2 : index
    %c0_48 = arith.constant 0 : index
    %c0_49 = arith.constant 0 : index
    %93 = vector.load %arg10[%c2_47, %c0_48, %c0_49] : memref<4x8x1xf32, #tpu.memory_space<vmem>>, vector<1x8x1xf32>
    %94 = vector.shape_cast %93 : vector<1x8x1xf32> to vector<8x1xf32>
    %95 = vector.shape_cast %92 : vector<8x1xf32> to vector<1x8x1xf32>
    tpu.vector_store %arg10[%c2_47, %c0_48, %c0_49], %95 {strides = array<i32>} : memref<4x8x1xf32, #tpu.memory_space<vmem>>, vector<1x8x1xf32>,
    %c2_50 = arith.constant 2 : index
    %c0_51 = arith.constant 0 : index
    %c0_52 = arith.constant 0 : index
    %96 = vector.load %arg9[%c2_50, %c0_51, %c0_52] : memref<4x8x1xf32, #tpu.memory_space<vmem>>, vector<1x8x1xf32>
    %97 = vector.shape_cast %96 : vector<1x8x1xf32> to vector<8x1xf32>
    %98 = vector.shape_cast %79 : vector<8x1xf32> to vector<1x8x1xf32>
    tpu.vector_store %arg9[%c2_50, %c0_51, %c0_52], %98 {strides = array<i32>} : memref<4x8x1xf32, #tpu.memory_space<vmem>>, vector<1x8x1xf32>,
    %cst_53 = arith.constant dense<0.000000e+00> : vector<8x8xf32>
    %99 = tpu.matmul %85, %73, %cst_53 {dimension_numbers = #tpu.dot_dimension_numbers<[1], [0], [0], [1], [0, 0, 1, 1], [], []>} : vector<8x8xbf16>, vector<8x8xbf16>, vector<8x8xf32> -> vector<8x8xf32>
    %100 = vector.shape_cast %81 : vector<8x1xf32> to vector<8x1xf32>
    %101 = vector.broadcast %100 : vector<8x1xf32> to vector<8x8xf32>
    %102 = vector.extract_strided_slice %4 {offsets = [0, 24], sizes = [8, 8], strides = [1, 1]} : vector<8x32xbf16> to vector<8x8xbf16>
    %103 = vector.extract_strided_slice %6 {offsets = [0, 24], sizes = [8, 8], strides = [1, 1]} : vector<8x32xbf16> to vector<8x8xbf16>
    %104 = vector.extract_strided_slice %8 {offsets = [0, 24], sizes = [8, 8], strides = [1, 1]} : vector<8x32xbf16> to vector<8x8xbf16>
    %cst_54 = arith.constant dense<0.000000e+00> : vector<8x8xf32>
    %105 = tpu.matmul %102, %103, %cst_54 {dimension_numbers = #tpu.dot_dimension_numbers<[1], [1], [0], [0], [0, 0, 1, 0], [], []>} : vector<8x8xbf16>, vector<8x8xbf16>, vector<8x8xf32> -> vector<8x8xf32>
    %c3 = arith.constant 3 : index
    %c0_55 = arith.constant 0 : index
    %c0_56 = arith.constant 0 : index
    %106 = vector.load %arg9[%c3, %c0_55, %c0_56] : memref<4x8x1xf32, #tpu.memory_space<vmem>>, vector<1x8x1xf32>
    %107 = vector.shape_cast %106 : vector<1x8x1xf32> to vector<8x1xf32>
    %cst_57 = arith.constant dense<0xFF800000> : vector<8xf32>
    %108 = vector.multi_reduction <maximumf>, %105, %cst_57 [1] : vector<8x8xf32> to vector<8xf32>
    %109 = vector.shape_cast %108 : vector<8xf32> to vector<8x1xf32>
    %110 = arith.maximumf %107, %109 : vector<8x1xf32>
    %111 = arith.subf %107, %110 : vector<8x1xf32>
    %112 = math.exp %111 : vector<8x1xf32>
    %113 = vector.broadcast %110 : vector<8x1xf32> to vector<8x8xf32>
    %114 = arith.subf %105, %113 : vector<8x8xf32>
    %115 = arith.truncf %114 : vector<8x8xf32> to vector<8x8xbf16>
    %116 = math.exp %115 : vector<8x8xbf16>
    %c3_58 = arith.constant 3 : index
    %c0_59 = arith.constant 0 : index
    %c0_60 = arith.constant 0 : index
    %117 = vector.load %arg10[%c3_58, %c0_59, %c0_60] : memref<4x8x1xf32, #tpu.memory_space<vmem>>, vector<1x8x1xf32>
    %118 = vector.shape_cast %117 : vector<1x8x1xf32> to vector<8x1xf32>
    %119 = arith.mulf %112, %118 : vector<8x1xf32>
    %120 = arith.extf %116 : vector<8x8xbf16> to vector<8x8xf32>
    %cst_61 = arith.constant dense<0.000000e+00> : vector<8xf32>
    %121 = vector.multi_reduction <add>, %120, %cst_61 [1] : vector<8x8xf32> to vector<8xf32>
    %122 = vector.shape_cast %121 : vector<8xf32> to vector<8x1xf32>
    %123 = arith.addf %119, %122 : vector<8x1xf32>
    %c3_62 = arith.constant 3 : index
    %c0_63 = arith.constant 0 : index
    %c0_64 = arith.constant 0 : index
    %124 = vector.load %arg10[%c3_62, %c0_63, %c0_64] : memref<4x8x1xf32, #tpu.memory_space<vmem>>, vector<1x8x1xf32>
    %125 = vector.shape_cast %124 : vector<1x8x1xf32> to vector<8x1xf32>
    %126 = vector.shape_cast %123 : vector<8x1xf32> to vector<1x8x1xf32>
    tpu.vector_store %arg10[%c3_62, %c0_63, %c0_64], %126 {strides = array<i32>} : memref<4x8x1xf32, #tpu.memory_space<vmem>>, vector<1x8x1xf32>,
    %c3_65 = arith.constant 3 : index
    %c0_66 = arith.constant 0 : index
    %c0_67 = arith.constant 0 : index
    %127 = vector.load %arg9[%c3_65, %c0_66, %c0_67] : memref<4x8x1xf32, #tpu.memory_space<vmem>>, vector<1x8x1xf32>
    %128 = vector.shape_cast %127 : vector<1x8x1xf32> to vector<8x1xf32>
    %129 = vector.shape_cast %110 : vector<8x1xf32> to vector<1x8x1xf32>
    tpu.vector_store %arg9[%c3_65, %c0_66, %c0_67], %129 {strides = array<i32>} : memref<4x8x1xf32, #tpu.memory_space<vmem>>, vector<1x8x1xf32>,
    %cst_68 = arith.constant dense<0.000000e+00> : vector<8x8xf32>
    %130 = tpu.matmul %116, %104, %cst_68 {dimension_numbers = #tpu.dot_dimension_numbers<[1], [0], [0], [1], [0, 0, 1, 1], [], []>} : vector<8x8xbf16>, vector<8x8xbf16>, vector<8x8xf32> -> vector<8x8xf32>
    %131 = vector.shape_cast %112 : vector<8x1xf32> to vector<8x1xf32>
    %132 = vector.broadcast %131 : vector<8x1xf32> to vector<8x8xf32>
    %133 = tpu.concatenate %37, %68, %99, %130 in 1 : vector<8x8xf32>, vector<8x8xf32>, vector<8x8xf32>, vector<8x8xf32> -> vector<8x32xf32>
    %134 = tpu.concatenate %39, %70, %101, %132 in 1 : vector<8x8xf32>, vector<8x8xf32>, vector<8x8xf32>, vector<8x8xf32> -> vector<8x32xf32>
    %c0_69 = arith.constant 0 : index
    %c0_70 = arith.constant 0 : index
    %135 = vector.load %arg11[%c0_69, %c0_70] : memref<8x32xf32, #tpu.memory_space<vmem>>, vector<8x32xf32>
    %136 = arith.mulf %135, %134 : vector<8x32xf32>
    %137 = arith.addf %136, %133 : vector<8x32xf32>
    %c0_71 = arith.constant 0 : index
    %c0_72 = arith.constant 0 : index
    %138 = vector.load %arg11[%c0_71, %c0_72] : memref<8x32xf32, #tpu.memory_space<vmem>>, vector<8x32xf32>
    tpu.vector_store %arg11[%c0_71, %c0_72], %137 {strides = array<i32>} : memref<8x32xf32, #tpu.memory_space<vmem>>, vector<8x32xf32>,
    %c0_i32_73 = arith.constant 0 : i32
    %139 = arith.cmpi eq, %arg2, %c0_i32_73 : i32
    %140 = arith.extui %139 : i1 to i32
    %c0_i32_74 = arith.constant 0 : i32
    %141 = arith.cmpi ne, %140, %c0_i32_74 : i32
    scf.if %141 {
      %c0_75 = arith.constant 0 : index
      %c0_76 = arith.constant 0 : index
      %c0_77 = arith.constant 0 : index
      %142 = vector.load %arg10[%c0_75, %c0_76, %c0_77] : memref<4x8x1xf32, #tpu.memory_space<vmem>>, vector<1x8x1xf32>
      %143 = vector.shape_cast %142 : vector<1x8x1xf32> to vector<8x1xf32>
      %cst_78 = arith.constant 1.000000e+00 : f32
      %144 = vector.broadcast %cst_78 : f32 to vector<8x1xf32>
      %145 = arith.divf %144, %143 : vector<8x1xf32>
      %146 = vector.shape_cast %145 : vector<8x1xf32> to vector<8x1xf32>
      %147 = vector.broadcast %146 : vector<8x1xf32> to vector<8x8xf32>
      %c1_79 = arith.constant 1 : index
      %c0_80 = arith.constant 0 : index
      %c0_81 = arith.constant 0 : index
      %148 = vector.load %arg10[%c1_79, %c0_80, %c0_81] : memref<4x8x1xf32, #tpu.memory_space<vmem>>, vector<1x8x1xf32>
      %149 = vector.shape_cast %148 : vector<1x8x1xf32> to vector<8x1xf32>
      %cst_82 = arith.constant 1.000000e+00 : f32
      %150 = vector.broadcast %cst_82 : f32 to vector<8x1xf32>
      %151 = arith.divf %150, %149 : vector<8x1xf32>
      %152 = vector.shape_cast %151 : vector<8x1xf32> to vector<8x1xf32>
      %153 = vector.broadcast %152 : vector<8x1xf32> to vector<8x8xf32>
      %c2_83 = arith.constant 2 : index
      %c0_84 = arith.constant 0 : index
      %c0_85 = arith.constant 0 : index
      %154 = vector.load %arg10[%c2_83, %c0_84, %c0_85] : memref<4x8x1xf32, #tpu.memory_space<vmem>>, vector<1x8x1xf32>
      %155 = vector.shape_cast %154 : vector<1x8x1xf32> to vector<8x1xf32>
      %cst_86 = arith.constant 1.000000e+00 : f32
      %156 = vector.broadcast %cst_86 : f32 to vector<8x1xf32>
      %157 = arith.divf %156, %155 : vector<8x1xf32>
      %158 = vector.shape_cast %157 : vector<8x1xf32> to vector<8x1xf32>
      %159 = vector.broadcast %158 : vector<8x1xf32> to vector<8x8xf32>
      %c3_87 = arith.constant 3 : index
      %c0_88 = arith.constant 0 : index
      %c0_89 = arith.constant 0 : index
      %160 = vector.load %arg10[%c3_87, %c0_88, %c0_89] : memref<4x8x1xf32, #tpu.memory_space<vmem>>, vector<1x8x1xf32>
      %161 = vector.shape_cast %160 : vector<1x8x1xf32> to vector<8x1xf32>
      %cst_90 = arith.constant 1.000000e+00 : f32
      %162 = vector.broadcast %cst_90 : f32 to vector<8x1xf32>
      %163 = arith.divf %162, %161 : vector<8x1xf32>
      %164 = vector.shape_cast %163 : vector<8x1xf32> to vector<8x1xf32>
      %165 = vector.broadcast %164 : vector<8x1xf32> to vector<8x8xf32>
      %166 = tpu.concatenate %147, %153, %159, %165 in 1 : vector<8x8xf32>, vector<8x8xf32>, vector<8x8xf32>, vector<8x8xf32> -> vector<8x32xf32>
      %c0_91 = arith.constant 0 : index
      %c0_92 = arith.constant 0 : index
      %167 = vector.load %arg11[%c0_91, %c0_92] : memref<8x32xf32, #tpu.memory_space<vmem>>, vector<8x32xf32>
      %168 = arith.mulf %167, %166 : vector<8x32xf32>
      %169 = arith.truncf %168 : vector<8x32xf32> to vector<8x32xbf16>
      %c0_93 = arith.constant 0 : index
      %c0_94 = arith.constant 0 : index
      %170 = vector.load %arg6[%c0_93, %c0_94] : memref<32x32xbf16, #tpu.memory_space<vmem>>, vector<32x32xbf16>
      %cst_95 = arith.constant dense<0.000000e+00> : vector<8x32xf32>
      %171 = tpu.matmul %169, %170, %cst_95 {dimension_numbers = #tpu.dot_dimension_numbers<[1], [0], [0], [1], [0, 0, 1, 1], [], []>} : vector<8x32xbf16>, vector<32x32xbf16>, vector<8x32xf32> -> vector<8x32xf32>
      %c0_96 = arith.constant 0 : index
      %c0_97 = arith.constant 0 : index
      %172 = vector.load %arg7[%c0_96, %c0_97] : memref<1x32xf32, #tpu.memory_space<vmem>>, vector<1x32xf32>
      %173 = vector.broadcast %172 : vector<1x32xf32> to vector<8x32xf32>
      %174 = arith.addf %171, %173 : vector<8x32xf32>
      %c0_98 = arith.constant 0 : index
      %c0_99 = arith.constant 0 : index
      %c0_100 = arith.constant 0 : index
      %175 = vector.load %arg8[%c0_98, %c0_99, %c0_100] : memref<1x8x32xf32, #tpu.memory_space<vmem>>, vector<1x8x32xf32>
      %176 = vector.shape_cast %175 : vector<1x8x32xf32> to vector<8x32xf32>
      %177 = vector.shape_cast %174 : vector<8x32xf32> to vector<1x8x32xf32>
      tpu.vector_store %arg8[%c0_98, %c0_99, %c0_100], %177 {strides = array<i32>} : memref<1x8x32xf32, #tpu.memory_space<vmem>>, vector<1x8x32xf32>,
    } else {
    }
    return
  }
  func.func @transform_0(%arg0: i32, %arg1: i32, %arg2: i32) -> (i32, i32, i32) {
    %c0_i32 = arith.constant 0 : i32
    %c0_i32_0 = arith.constant 0 : i32
    return %arg0, %arg1, %c0_i32 : i32, i32, i32
  }
  func.func @transform_1(%arg0: i32, %arg1: i32, %arg2: i32) -> (i32, i32, i32) {
    %c0_i32 = arith.constant 0 : i32
    %c0_i32_0 = arith.constant 0 : i32
    return %arg0, %arg2, %c0_i32 : i32, i32, i32
  }
  func.func @transform_2(%arg0: i32, %arg1: i32, %arg2: i32) -> (i32, i32, i32) {
    %c0_i32 = arith.constant 0 : i32
    %c0_i32_0 = arith.constant 0 : i32
    return %arg0, %arg2, %c0_i32 : i32, i32, i32
  }
  func.func @transform_3(%arg0: i32, %arg1: i32, %arg2: i32) -> (i32, i32) {
    %c0_i32 = arith.constant 0 : i32
    %c0_i32_0 = arith.constant 0 : i32
    %c0_i32_1 = arith.constant 0 : i32
    return %c0_i32, %c0_i32_0 : i32, i32
  }
  func.func @transform_4(%arg0: i32, %arg1: i32, %arg2: i32) -> (i32, i32) {
    %c0_i32 = arith.constant 0 : i32
    %c0_i32_0 = arith.constant 0 : i32
    %c0_i32_1 = arith.constant 0 : i32
    return %c0_i32, %c0_i32_0 : i32, i32
  }
  func.func @transform_5(%arg0: i32, %arg1: i32, %arg2: i32) -> (i32, i32, i32) {
    %c0_i32 = arith.constant 0 : i32
    %c0_i32_0 = arith.constant 0 : i32
    return %arg0, %arg1, %c0_i32 : i32, i32, i32
  }
}

</mosaic_0001>

<bundles_post_ra>
// kernel: _mha_impl.5
= control target key start
LH: loop header
LB: loop body
LE: loop exit
PB: predicated region body
PF: predicated region fallthrough
CT: control target
= control target key end

     0   :  { %vm19_vm0 = vcmask 261120   ;;  %v107_v1 = vmov 0.0   ;;  %vm82_vm1 = vcmask 257024   ;;  %s151_s1 = inlined_call_operand.vmem [shape: bf16[32,32], index: 1, kind: input, shape index: {}]   ;;  %s152_s2 = inlined_call_operand.vmem [shape: f32[1,32], index: 2, kind: input, shape index: {}]   ;;  %s153_s0 = inlined_call_operand.vmem [shape: bf16[16,32], index: 0, kind: input, shape index: {}]   ;;  %s154_s3 = inlined_call_operand.vmem [shape: bf16[16,32], index: 3, kind: output, shape index: {}]  }
   0x1   :  { %v104_v0 = vld [vmem:[%s151_s1 + $0x8] sm:$0xff]  ;;  %20 = vst.msk [vmem:[#allocation2] sm:$0xff] %vm19_vm0, %v107_v1  ;;  %v103_v2 = vld [vmem:[%s151_s1] sm:$0xff] }
   0x2   :  { %21 = vst.msk [vmem:[#allocation2 + $0x8] sm:$0xff] %vm19_vm0, %v107_v1  ;;  %57 = vmatpush.bf16.msra.mxu0 %v104_v0  ;;  %v102_v3 = vld [vmem:[%s153_s0] sm:$0xff] }
   0x3   :  { %v106_v8 = vld [vmem:[%s152_s2] ss:$0 sm:$0xff] }
   0x6   :  { %58 = vmatpush.bf16.msra.mxu0 %v103_v2 }
   0x8   :  { %v22_v4 = vld [vmem:[#allocation2] sm:$0xff] }
   0x9   :  { %101 = vmatmul.msk.bf16.vlgmr.msra.gmra.mxu0 %vm19_vm0, %v102_v3  ;;  %v23_v7 = vld [vmem:[#allocation2 + $0x8] sm:$0xff] }
  0x86   :  { %v60_v5 = vpop.f32.mrf.mxu0 }
  0x87   :  { %v65_v6 = vadd.f32 %v60_v5, %v22_v4 }
  0x89   :  { %67 = vst.msk [vmem:[#allocation2] sm:$0xff] %vm19_vm0, %v65_v6 }
  0x8e   :  { %v62_v9 = vpop.f32.mrf.mxu0 }
  0x8f   :  { %v66_v10 = vadd.f32 %v62_v9, %v23_v7 }
  0x90   :  { %v72_v11 = vld [vmem:[#allocation2] sm:$0xff] }
  0x91   :  { %v78_v12 = vadd.f32 %v106_v8, %v72_v11  ;;  %68 = vst.msk [vmem:[#allocation2 + $0x8] sm:$0xff] %vm19_vm0, %v66_v10 }
  0x93   :  { %v80_v13 = vpack.c.bf16 %v78_v12, %v78_v12 }
  0x95   :  { %83 = vst.msk [vmem:[%s154_s3] sm:$0xf] %vm82_vm1, %v80_v13 }
  0x98   :  { %v73_v14 = vld [vmem:[#allocation2 + $0x8] sm:$0xff] }
  0x99   :  { %v79_v15 = vadd.f32 %v106_v8, %v73_v14 }
  0x9b   :  { %v81_v16 = vpack.c.bf16 %v79_v15, %v79_v15 }
  0x9d   :  { %84 = vst.msk [vmem:[%s154_s3 + $0x4] sm:$0xf] %vm82_vm1, %v81_v16 }

// kernel: _mha_impl.7
= control target key start
LH: loop header
LB: loop body
LE: loop exit
PB: predicated region body
PF: predicated region fallthrough
CT: control target
= control target key end

     0   :  { %10 = vsyncpa [#allocation6], 0  ;;  %s1366_s0 = inlined_call_operand.vmem [shape: bf16[2,8,32], index: 0, kind: input, shape index: {}]   ;;  %s1367_s1 = inlined_call_operand.vmem [shape: bf16[2,8,32], index: 1, kind: input, shape index: {}]   ;;  %s1368_s2 = inlined_call_operand.vmem [shape: bf16[2,8,32], index: 2, kind: input, shape index: {}]   ;;  %s1369_s3 = inlined_call_operand.vmem [shape: bf16[32,32], index: 3, kind: input, shape index: {}]   ;;  %s1370_s4 = inlined_call_operand.vmem [shape: f32[1,32], index: 4, kind: input, shape index: {}]   ;;  %s1371_s5 = inlined_call_operand.hbm [shape: f32[2,8,32], index: 5, kind: output, shape index: {}]  }
   0x1   :  { %12 = vsyncpa [#allocation6 + $0x1], 0  ;;  %s1166_s18 = smov 0   ;;  %s1168_s19 = smov 0  }
   0x2   :  { %s1170_s20 = smov 0   ;;  %s1172_s21 = smov 0  }
   0x3   :  { %s1174_s22 = smov 0   ;;  %s1176_s23 = smov 0  }
   0x4 LB: > { %s923_s24 = sadd.s32 4294967295, %s1125_s23   ;;  %s924_s25 = sadd.s32 4294967294, %s1125_s23   ;;  %s1125_s23 = sphi %s1176_s23, %s18_s23   ;;  %s1121_s22 = sphi %s1174_s22, %s1378_s22   ;;  %s1117_s21 = sphi %s1172_s21, %s1377_s21   ;;  %s1113_s20 = sphi %s1170_s20, %s1376_s20   ;;  %s1109_s19 = sphi %s1168_s19, %s1375_s19   ;;  %s1105_s18 = sphi %s1166_s18, %s1374_s18  }
   0x5   : > { %s37_s26 = sadd.s32 1, %s1121_s22  ;;  %s172_s27 = sadd.s32 1, %s1113_s20 }
   0x6   : > { %p39_p0 = scmp.ge.s32.totalorder %s37_s26, 2  ;;  %p182_p1 = scmp.ne.s32.totalorder %s1113_s20, %s1109_s19 }
   0x7   : > { %p183_p2 = scmp.eq.s32.totalorder %s923_s24, 1  ;;  %p188_p3 = scmp.ne.s32.totalorder %s1109_s19, %s1105_s18 }
   0x8   : > { %s1380_s26 = smov (%p39_p0, %s37_s26), 0  ;;  %p189_p5 = scmp.eq.s32.totalorder %s924_s25, 1 }
   0x9   : > { %p1206_p4 = por %p183_p2, %p182_p1  ;;  %s167_s29 = ssub.s32 %s1121_s22, %s1380_s26 }
   0xa   : > { %p927_p6 = scmp.ge.s32.totalorder %s1125_s23, 1  ;;  %p170_p7 = scmp.eq.s32.totalorder %s167_s29, 0 }
   0xb   : > { %p1213_p8 = por %p189_p5, %p188_p3  ;;  %p243_p9 = scmp.lt.s32.totalorder %s1125_s23, 3 }
   0xc   : > { %s1219_s6 = scalar_select %p170_p7, %s1113_s20, %s172_s27  }
   0xd   : > { %p244_p10 = pnand %p927_p6, %p243_p9 }
   0xe   : > { %p287_p11 = scmp.lt.s32.totalorder (!%p244_p10), %s1117_s21, 1  ;;  %s1127_s15 = smov (!%p244_p10), 120  }
   0xf   : > { %247 = sbr.rel (%p244_p10) target bundleno = 1176 (0x498), region = 40  ;;  %s1128_s16 = smov (!%p244_p10), 112  }
  0x10   : > { %s1129_s17 = smov (!%p244_p10), 104   ;;  %s1133_s29 = smov (!%p244_p10), 8  }
  0x11   : > { %s284_s13 = sand.u32 (!%p244_p10), 1, %s1109_s19  }
  0x14   : > { %s288_s7 = scalar_select %p287_p11, %s1117_s21, 1  ;;  %vm327_vm0 = vcmask 64512   ;;  %vm313_vm1 = vcmask 7168   ;;  %v1130_v8 = vmov -inf   ;;  %v1131_v18 = vmov 0  }
  0x15   : > { %314 = vst.msk [vmem:[#allocation2] sm:$0xff] %vm313_vm1, %v1130_v8  ;;  %1019 = vset.pattern.permute.xlu0 %v1131_v18  ;;  %1020 = vset.pattern.permute.xlu2 %v1131_v18  ;;  %v1132_v19 = vmov 0.0   ;;  %vm379_vm2 = vcmask 1043456   ;;  %vm322_vm11 = vcmask 261120  }
  0x16   : > { %s1223_s8 = sshll.u32 %s288_s7, 2  ;;  %315 = vst.msk [vmem:[#allocation2 + $0x8] sm:$0xff] %vm313_vm1, %v1130_v8  ;;  %1021 = vset.pattern.permute.xlu1 %v1131_v18  ;;  %s1134_s7 = smov 24  }
  0x17   : > { %s300_s11 = scalar_lea.vmem %s1367_s1, %s1223_s8  ;;  %s293_s14 = scalar_lea.vmem %s1366_s0, %s1223_s8  ;;  %316 = vst.msk [vmem:[#allocation2 + $0x10] sm:$0xff] %vm313_vm1, %v1130_v8 }
  0x18   : > { %v325_v0 = vld [vmem:[%s300_s11] sm:$0xf]  ;;  %317 = vst.msk [vmem:[#allocation2 + $0x18] sm:$0xff] %vm313_vm1, %v1130_v8  ;;  %s307_s27 = scalar_lea.vmem %s1368_s2, %s1223_s8  ;;  %s1135_s8 = smov 16  }
  0x19   : > { %v332_v1 = vsel %vm327_vm0, %v325_v0, 0  ;;  %v407_v2 = vunpack.c.l.b16 %v325_v0  ;;  %v324_v4 = vld [vmem:[%s293_s14] sm:$0xf]  ;;  %318 = vst.msk [vmem:[#allocation3] sm:$0xff] %vm313_vm1, %v1132_v19  ;;  %s950_s14 = sshll.u32 %s1117_s21, 3  ;;  %s803_s21 = scalar_lea.sflag [#allocation6], %s284_s13 }
  0x1a   : > { %341 = vmatpush.bf16.xpose.msra.mxu0 %v332_v1  ;;  %v402_v5 = vunpack.c.l.b16 %v324_v4  ;;  %319 = vst.msk [vmem:[#allocation3 + $0x8] sm:$0xff] %vm313_vm1, %v1132_v19  ;;  %v326_v28 = vld [vmem:[%s307_s27] sm:$0xf]  ;;  %s814_s24 = scalar_lea.hbm %s1371_s5, %s950_s14  ;;  %s1067_s14 = scalar_lea.hbm %s1371_s5, 16 }
  0x1b   : > { %v408_v3 = vpack.c.b16 %v407_v2, %v407_v2  ;;  %320 = vst.msk [vmem:[#allocation3 + $0x10] sm:$0xff] %vm313_vm1, %v1132_v19  ;;  %v381_v30 = vsel %vm379_vm2, %v326_v28, 0  ;;  %v461_v32 = vunpack.c.l.b16 %v326_v28 }
  0x1c   : > { %v403_v6 = vpack.c.b16 %v402_v5, %v402_v5  ;;  %321 = vst.msk [vmem:[#allocation3 + $0x18] sm:$0xff] %vm313_vm1, %v1132_v19  ;;  %v347_v20 = vld [vmem:[#allocation2] sm:$0xff]  ;;  %390 = vmatpush.bf16.msra.mxu1 %v381_v30 }
  0x1d   : > { %409 = vrot.lane.b32.xlu1 %v408_v3, %s1127_s15  ;;  %491 = vrot.lane.b32.xlu2 %v408_v3, %s1128_s16  ;;  %v1269_v33 = vpack.c.b16 %v461_v32, %v461_v32  ;;  %v431_v44 = vld [vmem:[#allocation2 + $0x8] sm:$0xff]  ;;  %323 = vst.msk [vmem:[#allocation4] sm:$0xff] %vm322_vm11, %v1132_v19 }
  0x1f   : > { %v592_v48 = vld [vmem:[#allocation2 + $0x18] sm:$0xff] }
  0x20   : > { %v366_v56 = vld [vmem:[#allocation3] sm:$0xff] }
  0x21   : > { %932 = vmatmul.msk.bf16.vlgmr.msra.gmra.mxu0 %vm327_vm0, %v324_v4 }
  0x25   : > { %404 = vrot.lane.b32.xlu1 %v403_v6, %s1127_s15  ;;  %570 = vrot.lane.b32.xlu2 %v408_v3, %s1129_s17 }
  0x2d   : > { %568 = vrot.lane.b32.xlu2 %v403_v6, %s1129_s17  ;;  %489 = vrot.lane.b32.xlu1 %v403_v6, %s1128_s16 }
  0x77   : > { %v492_v7 = vpop.permute.xlu2 %491 }
  0x78   : > { %v497_v29 = vsel %vm327_vm0, %v492_v7, 0 }
  0x79   : > { %506 = vmatpush.bf16.xpose.msrb.mxu1 %v497_v29 }
  0x7f   : > { %v571_v9 = vpop.permute.xlu2 %570 }
  0x80   : > { %v576_v10 = vsel %vm327_vm0, %v571_v9, 0 }
  0x81   : > { %585 = vmatpush.bf16.xpose.msrb.mxu0 %v576_v10 }
  0x87   : > { %v569_v13 = vpop.permute.xlu2 %568 }
  0x88   : > { %938 = vmatmul.msk.bf16.vlgmr.msrb.gmra.mxu0 %vm327_vm0, %v569_v13 }
  0x8f   : > { %v410_v11 = vpop.permute.xlu1 %409 }
  0x90   : > { %v415_v12 = vsel %vm327_vm0, %v410_v11, 0 }
  0x91   : > { %424 = vmatpush.bf16.xpose.msra.mxu2 %v415_v12 }
  0x97   : > { %v405_v14 = vpop.permute.xlu1 %404 }
  0x98   : > { %934 = vmatmul.msk.bf16.vlgmr.msra.gmra.mxu2 %vm327_vm0, %v405_v14  ;;  %v513_v14 = vld [vmem:[#allocation2 + $0x10] sm:$0xff] }
  0x9e   : > { %v343_v15 = vpop.f32.mrf.mxu0 }
  0x9f   : > { %v348_v16 = vsel %vm327_vm0, %v343_v15, -inf  ;;  %v490_v40 = vpop.permute.xlu1 %489 }
  0xa0   : > { %349 = vmax.xlane.f32.xlu0 %v348_v16 }
  0xa6   : > { %v345_v17 = vpop.f32.mrf.mxu0 }
 0x105   : > { %v587_v23 = vpop.f32.mrf.mxu0 }
 0x106   : > { %v593_v34 = vsel %vm327_vm0, %v587_v23, -inf }
 0x10d   : > { %v589_v25 = vpop.f32.mrf.mxu0 }
 0x113   : > { %v350_v21 = vpop.xlane.xlu0 %349 }
 0x114   : > { %v351_v22 = vmax.f32 %v347_v20, %v350_v21 }
 0x116   : > { %v352_v24 = vsub.f32 %v347_v20, %v351_v22  ;;  %375 = vst.msk [vmem:[#allocation2] sm:$0xff] %vm313_vm1, %v351_v22  ;;  %357 = vperm.xlu0 %1019, %v351_v22  }
 0x118   : > { %v353_v53 = vmul.f32 1.442695, %v352_v24 }
 0x11b   : > { %v1263_v26 = vpop.f32.mrf.mxu2 }
 0x11c   : > { %v432_v27 = vsel %vm327_vm0, %v1263_v26, -inf }
 0x11d   : > { %433 = vmax.xlane.f32.xlu1 %v432_v27  ;;  %v612_v27 = vld [vmem:[#allocation3 + $0x18] sm:$0xff] }
 0x123   : > { %v428_v31 = vpop.f32.mrf.mxu2 }
 0x136   : > { %463 = vrot.lane.b32.xlu1 %v1269_v33, %s1127_s15  ;;  %s928_s15 = sshll.u32 %s284_s13, 3 }
 0x13e   : > { %542 = vrot.lane.b32.xlu1 %v1269_v33, %s1128_s16 }
 0x140   : > { %594 = vmax.xlane.f32.xlu0 %v593_v34 }
 0x188   : > { %v358_v35 = vpop.permute.xlu0 %357 }
 0x189   : > { %v360_v36 = vsub.f32 %v343_v15, %v358_v35 }
 0x18b   : > { %v361_v37 = vpack.c.bf16 %v360_v36, %v360_v36 }
 0x18d   : > { %v362_v38 = vunpack.c.l.bf16 %v361_v37 }
 0x18f   : > { %v363_v39 = vmul.f32 1.442695, %v362_v38 }
 0x190   : > { %v434_v45 = vpop.xlane.xlu1 %433 }
 0x191   : > { %1023 = vpow2.f32 %v363_v39  ;;  %v435_v46 = vmax.f32 %v431_v44, %v434_v45 }
 0x192   : > { %1025 = vpow2.f32 %v353_v53 }
 0x193   : > { %459 = vst.msk [vmem:[#allocation2 + $0x8] sm:$0xff] %vm313_vm1, %v435_v46  ;;  %v436_v10 = vsub.f32 %v431_v44, %v435_v46 }
 0x195   : > { %v437_v11 = vmul.f32 1.442695, %v436_v10 }
 0x197   : > { %v1024_v41 = vpop.eup %1023 }
 0x198   : > { %v365_v42 = vpack.c.bf16 %v1024_v41, %v1024_v41  ;;  %v1026_v55 = vpop.eup %1025 }
 0x199   : > { %v367_v57 = vmul.f32 %v1026_v55, %v366_v56 }
 0x19a   : > { %933 = vmatmul.msk.bf16.vlgmr.msra.gmra.mxu1 %vm327_vm0, %v365_v42  ;;  %v368_v43 = vunpack.c.l.bf16 %v365_v42 }
 0x19c   : > { %v369_v47 = vsel %vm327_vm0, %v368_v43, 0.0 }
 0x19d   : > { %370 = vadd.xlane.f32.xlu1 %v369_v47 }
 0x1a8   : > { %v464_v52 = vpop.permute.xlu1 %463 }
 0x1a9   : > { %v469_v13 = vsel %vm379_vm2, %v464_v52, 0 }
 0x1aa   : > { %936 = vmatmul.msk.bf16.vlgmr.msrb.gmra.mxu1 %vm327_vm0, %v490_v40  ;;  %478 = vmatpush.bf16.msra.mxu3 %v469_v13 }
 0x1b0   : > { %v543_v54 = vpop.permute.xlu1 %542 }
 0x1b3   : > { %v595_v49 = vpop.xlane.xlu0 %594 }
 0x1b4   : > { %v596_v50 = vmax.f32 %v592_v48, %v595_v49 }
 0x1b6   : > { %v597_v51 = vsub.f32 %v592_v48, %v596_v50  ;;  %620 = vst.msk [vmem:[#allocation2 + $0x18] sm:$0xff] %vm313_vm1, %v596_v50  ;;  %602 = vperm.xlu0 %1019, %v596_v50  }
 0x1b8   : > { %v598_v18 = vmul.f32 1.442695, %v597_v51 }
 0x210   : > { %v371_v58 = vpop.xlane.xlu1 %370 }
 0x211   : > { %v372_v59 = vadd.f32 %v371_v58, %v367_v57 }
 0x213   : > { %374 = vst.msk [vmem:[#allocation3] sm:$0xff] %vm313_vm1, %v372_v59 }
 0x217   : > { %v1282_v60 = vpop.f32.mrf.mxu1 }
 0x21a   : > { %v675_v48 = vld [vmem:[#allocation3] sm:$0xff] }
 0x21b   : > { %v687_v59 = vand.u32 2147483648, %v675_v48  ;;  %vm681_vm4 = vweird.f32 %v675_v48 }
 0x21f   : > { %v394_v61 = vpop.f32.mrf.mxu1 }
 0x220   : > { %v685_v61 = vand.u32 2147483647, %v675_v48 }
 0x222   : > { %vm686_vm6 = vcmp.eq.f32.partialorder %v685_v61, 8.507059e+37 }
 0x227   : > { %v508_v62 = vpop.f32.mrf.mxu1 }
 0x228   : > { %v603_v63 = vpop.permute.xlu0 %602  ;;  %v514_v0 = vsel %vm327_vm0, %v508_v62, -inf }
 0x229   : > { %v605_v1 = vsub.f32 %v587_v23, %v603_v63  ;;  %515 = vmax.xlane.f32.xlu2 %v514_v0  ;;  %v688_v0 = vor.u32 1.1754944e-38, %v687_v59 }
 0x22b   : > { %v606_v2 = vpack.c.bf16 %v605_v1, %v605_v1  ;;  %v451_v1 = vld [vmem:[#allocation3 + $0x8] sm:$0xff] }
 0x22d   : > { %v607_v3 = vunpack.c.l.bf16 %v606_v2 }
 0x22f   : > { %v608_v4 = vmul.f32 1.442695, %v607_v3  ;;  %v510_v5 = vpop.f32.mrf.mxu1 }
 0x231   : > { %1027 = vpow2.f32 %v608_v4 }
 0x232   : > { %1029 = vpow2.f32 %v437_v11 }
 0x233   : > { %1031 = vpow2.f32 %v598_v18 }
 0x237   : > { %v1028_v6 = vpop.eup %1027 }
 0x238   : > { %v610_v7 = vpack.c.bf16 %v1028_v6, %v1028_v6  ;;  %v1286_v12 = vpop.eup %1029 }
 0x239   : > { %v1032_v25 = vpop.eup %1031  ;;  %v452_v4 = vmul.f32 %v1286_v12, %v451_v1 }
 0x23a   : > { %v614_v8 = vunpack.c.l.bf16 %v610_v7  ;;  %v613_v28 = vmul.f32 %v1032_v25, %v612_v27 }
 0x23c   : > { %v615_v9 = vsel %vm327_vm0, %v614_v8, 0.0 }
 0x23d   : > { %616 = vadd.xlane.f32.xlu1 %v615_v9 }
 0x241   : > { %441 = vperm.xlu2 %1020, %v435_v46  }
 0x256   : > { %486 = vperm.xlu1 %1021, %v1286_v12  }
 0x29c   : > { %v516_v15 = vpop.xlane.xlu2 %515 }
 0x29d   : > { %v517_v16 = vmax.f32 %v513_v14, %v516_v15 }
 0x29f   : > { %v518_v17 = vsub.f32 %v513_v14, %v517_v16  ;;  %541 = vst.msk [vmem:[#allocation2 + $0x10] sm:$0xff] %vm313_vm1, %v517_v16  ;;  %523 = vperm.xlu2 %1020, %v517_v16   ;;  %v533_v14 = vld [vmem:[#allocation3 + $0x10] sm:$0xff] }
 0x2a1   : > { %v519_v46 = vmul.f32 1.442695, %v518_v17 }
 0x2a4   : > { %v442_v20 = vpop.permute.xlu2 %441 }
 0x2a5   : > { %v444_v21 = vsub.f32 %v1263_v26, %v442_v20 }
 0x2a7   : > { %v445_v22 = vpack.c.bf16 %v444_v21, %v444_v21  ;;  %621 = vrot.lane.b32.xlu2 %v1269_v33, %s1129_s17  ;;  %v548_v33 = vsel %vm379_vm2, %v543_v54, 0 }
 0x2a8   : > { %557 = vmatpush.bf16.msrb.mxu3 %v548_v33 }
 0x2a9   : > { %v446_v23 = vunpack.c.l.bf16 %v445_v22 }
 0x2ab   : > { %v447_v24 = vmul.f32 1.442695, %v446_v23 }
 0x2ad   : > { %1033 = vpow2.f32 %v447_v24 }
 0x2b0   : > { %v617_v29 = vpop.xlane.xlu1 %616 }
 0x2b1   : > { %v618_v30 = vadd.f32 %v617_v29, %v613_v28 }
 0x2b3   : > { %v1034_v31 = vpop.eup %1033  ;;  %619 = vst.msk [vmem:[#allocation3 + $0x18] sm:$0xff] %vm313_vm1, %v618_v30 }
 0x2b4   : > { %v449_v32 = vpack.c.bf16 %v1034_v31, %v1034_v31 }
 0x2b6   : > { %935 = vmatmul.msk.bf16.vlgmr.msra.gmra.mxu3 %vm327_vm0, %v449_v32  ;;  %v453_v26 = vunpack.c.l.bf16 %v449_v32 }
 0x2b8   : > { %v454_v34 = vsel %vm327_vm0, %v453_v26, 0.0 }
 0x2ba   : > { %v738_v49 = vld [vmem:[#allocation3 + $0x18] sm:$0xff] }
 0x2bb   : > { %vm744_vm8 = vweird.f32 %v738_v49  ;;  %v748_v9 = vand.u32 2147483647, %v738_v49 }
 0x2bd   : > { %vm749_vm10 = vcmp.eq.f32.partialorder %v748_v9, 8.507059e+37 }
 0x2d0   : > { %455 = vadd.xlane.f32.xlu2 %v454_v34 }
 0x2e8   : > { %398 = vperm.xlu2 %1020, %v1026_v55  }
 0x2f0   : > { %644 = vperm.xlu2 %1020, %v1032_v25  }
 0x2f9   : > { %v524_v35 = vpop.permute.xlu2 %523 }
 0x2fa   : > { %v526_v36 = vsub.f32 %v508_v62, %v524_v35 }
 0x2fc   : > { %v527_v37 = vpack.c.bf16 %v526_v36, %v526_v36 }
 0x2fe   : > { %v528_v38 = vunpack.c.l.bf16 %v527_v37 }
 0x300   : > { %v529_v39 = vmul.f32 1.442695, %v528_v38 }
 0x301   : > { %v622_v40 = vpop.permute.xlu2 %621 }
 0x302   : > { %1035 = vpow2.f32 %v529_v39  ;;  %v627_v41 = vsel %vm379_vm2, %v622_v40, 0 }
 0x303   : > { %636 = vmatpush.bf16.msrb.mxu2 %v627_v41  ;;  %1037 = vpow2.f32 %v519_v46 }
 0x304   : > { %1039 = vrcp.f32 %v675_v48 }
 0x305   : > { %1041 = vrcp.f32 %v738_v49 }
 0x306   : > { %939 = vmatmul.msk.bf16.vlgmr.msrb.gmra.mxu2 %vm327_vm0, %v610_v7  ;;  %v750_v7 = vand.u32 2147483648, %v738_v49 }
 0x308   : > { %v1036_v42 = vpop.eup %1035  ;;  %v751_v11 = vor.u32 1.1754944e-38, %v750_v7  ;;  %v1022_v7 = vld [vmem:[%s1370_s4] ss:$0 sm:$0xff] }
 0x309   : > { %v531_v43 = vpack.c.bf16 %v1036_v42, %v1036_v42  ;;  %v1038_v47 = vpop.eup %1037 }
 0x30a   : > { %v1040_v50 = vpop.eup %1039  ;;  %v534_v16 = vmul.f32 %v1038_v47, %v533_v14 }
 0x30b   : > { %937 = vmatmul.msk.bf16.vlgmr.msrb.gmra.mxu3 %vm327_vm0, %v531_v43  ;;  %v535_v44 = vunpack.c.l.bf16 %v531_v43  ;;  %v677_v51 = vmul.f32 %v1040_v50, %v675_v48  ;;  %v1042_v53 = vpop.eup %1041  ;;  %vm682_vm3 = vweird.f32 %v1040_v50  ;;  %v954_v43 = vld [vmem:[%s1369_s3 + $0x8] sm:$0xff]  ;;  %v487_v48 = vpop.permute.xlu1 %486 }
 0x30c   : > { %v740_v55 = vmul.f32 %v1042_v53, %v738_v49  ;;  %vm683_vm5 = vmor %vm681_vm4, %vm682_vm3  ;;  %vm745_vm7 = vweird.f32 %v1042_v53  ;;  %794 = vmatpush.bf16.msra.mxu1 %v954_v43 }
 0x30d   : > { %v536_v45 = vsel %vm327_vm0, %v535_v44, 0.0  ;;  %v678_v52 = vsub.f32 1.0, %v677_v51  ;;  %vm746_vm9 = vmor %vm744_vm8, %vm745_vm7  ;;  %v953_v44 = vld [vmem:[%s1369_s3] sm:$0xff] }
 0x30e   : > { %537 = vadd.xlane.f32.xlu0 %v536_v45  ;;  %v741_v58 = vsub.f32 1.0, %v740_v55 }
 0x30f   : > { %v679_v54 = vmul.f32 %v1040_v50, %v678_v52  ;;  %v667_v52 = vld [vmem:[#allocation4] sm:$0xff] }
 0x310   : > { %v742_v63 = vmul.f32 %v1042_v53, %v741_v58  ;;  %795 = vmatpush.bf16.msra.mxu1 %v953_v44 }
 0x311   : > { %v680_v57 = vadd.f32 %v1040_v50, %v679_v54 }
 0x312   : > { %v743_v5 = vadd.f32 %v1042_v53, %v742_v63 }
 0x313   : > { %v684_v62 = vsel %vm683_vm5, %v1040_v50, %v680_v57  ;;  %vm660_vm5 = vcmask 130048  }
 0x314   : > { %v689_v3 = vsel %vm686_vm6, %v688_v0, %v684_v62  ;;  %v747_v10 = vsel %vm746_vm9, %v1042_v53, %v743_v5  ;;  %vm662_vm6 = vcmask 195584  }
 0x315   : > { %v752_v13 = vsel %vm749_vm10, %v751_v11, %v747_v10 }
 0x322   : > { %565 = vperm.xlu0 %1019, %v1038_v47  }
 0x339   : > { %v480_v56 = vpop.f32.mrf.mxu3 }
 0x33a   : > { %648 = vrot.lane.b32.xlu0 %v480_v56, %s1133_s29  ;;  %s286_s29 = scalar_lea.vmem [#allocation5], %s928_s15 }
 0x341   : > { %v482_v2 = vpop.f32.mrf.mxu3 }
 0x342   : > { %693 = vperm.xlu0 %1019, %v689_v3  }
 0x343   : > { %v456_v6 = vpop.xlane.xlu2 %455 }
 0x344   : > { %v457_v8 = vadd.f32 %v456_v6, %v452_v4 }
 0x346   : > { %458 = vst.msk [vmem:[#allocation3 + $0x8] sm:$0xff] %vm313_vm1, %v457_v8 }
 0x34a   : > { %756 = vperm.xlu0 %1019, %v752_v13  }
 0x34b   : > { %v399_v46 = vpop.permute.xlu2 %398 }
 0x34c   : > { %v664_v50 = vsel %vm327_vm0, %v399_v46, %v487_v48 }
 0x34d   : > { %v696_v12 = vld [vmem:[#allocation3 + $0x8] sm:$0xff] }
 0x34e   : > { %1043 = vrcp.f32 %v696_v12  ;;  %v708_v27 = vand.u32 2147483648, %v696_v12  ;;  %vm702_vm13 = vweird.f32 %v696_v12  ;;  %v706_v29 = vand.u32 2147483647, %v696_v12 }
 0x350   : > { %v709_v26 = vor.u32 1.1754944e-38, %v708_v27  ;;  %vm707_vm15 = vcmp.eq.f32.partialorder %v706_v29, 8.507059e+37 }
 0x353   : > { %v645_v49 = vpop.permute.xlu2 %644 }
 0x354   : > { %v1044_v15 = vpop.eup %1043 }
 0x355   : > { %v698_v20 = vmul.f32 %v1044_v15, %v696_v12  ;;  %vm703_vm12 = vweird.f32 %v1044_v15 }
 0x356   : > { %vm704_vm14 = vmor %vm702_vm13, %vm703_vm12 }
 0x357   : > { %v699_v21 = vsub.f32 1.0, %v698_v20 }
 0x359   : > { %v700_v23 = vmul.f32 %v1044_v15, %v699_v21 }
 0x35b   : > { %v701_v19 = vadd.f32 %v1044_v15, %v700_v23 }
 0x35d   : > { %v705_v31 = vsel %vm704_vm14, %v1044_v15, %v701_v19 }
 0x35e   : > { %v710_v35 = vsel %vm707_vm15, %v709_v26, %v705_v31 }
 0x381   : > { %v538_v17 = vpop.xlane.xlu0 %537 }
 0x382   : > { %v539_v18 = vadd.f32 %v538_v17, %v534_v16 }
 0x384   : > { %540 = vst.msk [vmem:[#allocation3 + $0x10] sm:$0xff] %vm313_vm1, %v539_v18 }
 0x389   : > { %v638_v22 = vpop.f32.mrf.mxu2 }
 0x38a   : > { %656 = vrot.lane.b32.xlu2 %v638_v22, %s1134_s7  ;;  %s816_s7 = sshll.u32 %s286_s29, 4  ;;  %s817_s7 = int_to_ptr.vmem [resolvable:$true] %s816_s7 }
 0x38b   : > { %v717_v24 = vld [vmem:[#allocation3 + $0x10] sm:$0xff] }
 0x38c   : > { %1045 = vrcp.f32 %v717_v24  ;;  %v729_v36 = vand.u32 2147483648, %v717_v24  ;;  %v727_v38 = vand.u32 2147483647, %v717_v24  ;;  %vm723_vm2 = vweird.f32 %v717_v24 }
 0x38e   : > { %v559_v25 = vpop.f32.mrf.mxu3  ;;  %v730_v40 = vor.u32 1.1754944e-38, %v729_v36  ;;  %vm728_vm4 = vcmp.eq.f32.partialorder %v727_v38, 8.507059e+37 }
 0x38f   : > { %652 = vrot.lane.b32.xlu1 %v559_v25, %s1135_s8  ;;  %s818_s8 = sshll.u32 %s814_s24, 4  ;;  %s819_s8 = int_to_ptr.hbm [resolvable:$true] %s818_s8 }
 0x390   : > { %s1061_s9 = sshra.s32 %s819_s8, 4  ;;  %s1062_s9 = int_to_ptr.hbm [resolvable:$true] %s1061_s9 }
 0x391   : > { %v640_v28 = vpop.f32.mrf.mxu2  ;;  %s1063_s10 = scalar_lea.hbm %s1062_s9, 8  ;;  %p1068_p1 = scmp.lt.s32.totalorder %s1062_s9, %s1371_s5 }
 0x392   : > { %v1046_v30 = vpop.eup %1045  ;;  %p1064_p12 = scmp.ne.s32.totalorder %s1062_s9, %s1063_s10  ;;  %p1069_p2 = scmp.lt.s32.totalorder %s1067_s14, %s1063_s10 }
 0x393   : > { %v719_v32 = vmul.f32 %v1046_v30, %v717_v24  ;;  %vm724_vm1 = vweird.f32 %v1046_v30 }
 0x394   : > { %vm725_vm3 = vmor %vm723_vm2, %vm724_vm1  ;;  %v566_v45 = vpop.permute.xlu0 %565  ;;  %p1065_p13 = pnand %p1064_p12, %p1206_p4  ;;  %p1070_p3 = por %p1069_p2, %p1068_p1 }
 0x395   : > { %v720_v34 = vsub.f32 1.0, %v719_v32  ;;  %v665_v51 = vsel %vm660_vm5, %v664_v50, %v566_v45 }
 0x396   : > { %v561_v33 = vpop.f32.mrf.mxu3  ;;  %v666_v53 = vsel %vm662_vm6, %v665_v51, %v645_v49  ;;  %p1066_p0 = pneg %p1065_p13 }
 0x397   : > { %714 = vperm.xlu1 %1021, %v710_v35   ;;  %v721_v37 = vmul.f32 %v1046_v30, %v720_v34  ;;  %v668_v57 = vmul.f32 %v667_v52, %v666_v53 }
 0x398   : > { %p1071_p5 = pnand %p1070_p3, %p1066_p0 }
 0x399   : > { %v722_v39 = vadd.f32 %v1046_v30, %v721_v37 }
 0x39b   : > { %v726_v41 = vsel %vm725_vm3, %v1046_v30, %v722_v39 }
 0x39c   : > { %v731_v42 = vsel %vm728_vm4, %v730_v40, %v726_v41 }
 0x39d   : > { %735 = vperm.xlu2 %1020, %v731_v42  }
 0x3ac   : > { %v649_v47 = vpop.permute.xlu0 %648 }
 0x3ad   : > { %v659_v54 = vsel %vm327_vm0, %v1282_v60, %v649_v47 }
 0x3b4   : > { %v694_v55 = vpop.permute.xlu0 %693 }
 0x3bc   : > { %v757_v2 = vpop.permute.xlu0 %756 }
 0x3e4   : > { %v657_v58 = vpop.permute.xlu2 %656 }
 0x3f7   : > { %v736_v0 = vpop.permute.xlu2 %735 }
 0x401   : > { %v653_v56 = vpop.permute.xlu1 %652 }
 0x402   : > { %v661_v59 = vsel %vm660_vm5, %v659_v54, %v653_v56 }
 0x403   : > { %v663_v61 = vsel %vm662_vm6, %v661_v59, %v657_v58 }
 0x404   : > { %v669_v62 = vadd.f32 %v668_v57, %v663_v61 }
 0x406   : > { %671 = vst.msk [vmem:[#allocation4] sm:$0xff] %vm322_vm11, %v669_v62 }
 0x409   : > { %v715_v63 = vpop.permute.xlu1 %714 }
 0x40a   : > { %v759_v1 = vsel %vm327_vm0, %v694_v55, %v715_v63 }
 0x40b   : > { %v760_v60 = vsel %vm660_vm5, %v759_v1, %v736_v0 }
 0x40c   : > { %v761_v3 = vsel %vm662_vm6, %v760_v60, %v757_v2 }
 0x40d   : > { %v762_v4 = vld [vmem:[#allocation4] sm:$0xff] }
 0x40e   : > { %v763_v5 = vmul.f32 %v762_v4, %v761_v3 }
 0x410   : > { %v764_v6 = vpack.c.bf16 %v763_v5, %v763_v5 }
 0x412   : > { %948 = vmatmul.msk.bf16.vlgmr.msra.gmra.mxu1 %vm322_vm11, %v764_v6 }
 0x48f   : > { %v797_v8 = vpop.f32.mrf.mxu1 }
 0x490   : > { %v798_v9 = vadd.f32 %v1022_v7, %v797_v8 }
 0x492   : > { %801 = vst.msk [vmem:[%s286_s29] sm:$0xff] %vm322_vm11, %v798_v9 }
 0x493   : > { %1074 = shalt.err (!%p1071_p5)
}
 0x494   : > { %955 = dma.vmem_to_hbm [thread:$0]  (%p1206_p4), %s817_s7, 128, %s819_s8, %s803_s21  }
 0x497   : > { %v799_v10 = vpop.f32.mrf.mxu1 }
 0x498 PF: > { %p961_p6 = scmp.ge.s32.totalorder %s1125_s23, 2  ;;  %s830_s13 = sand.u32 1, %s1105_s18  }
 0x499   : > { %s831_s17 = scalar_lea.sflag [#allocation6], %s830_s13 }
 0x49a   : > { %p958_p7 = pnand %p961_p6, %p1213_p8 }
 0x49c   : > { %p959_p9 = pneg %p958_p7 }
 0x49e   : > { %1100 = dma.done.wait (%p959_p9), %s831_s17, 128  }
 0x49f   : > { %1102 = vsyncadd (%p959_p9), %s831_s17, 4294967168  ;;  %s18_s23 = sadd.s32 1, %s1125_s23   ;;  %s1374_s18 = smov %s1109_s19 }
 0x4a0   : > { %p15_p10 = scmp.ge.s32.totalorder %s18_s23, 4   ;;  %s1375_s19 = smov %s1113_s20 }
 0x4a1   : > { %s1376_s20 = smov %s1219_s6  ;;  %s1377_s21 = smov %s1121_s22 }
 0x4a2   : > { %s1378_s22 = smov %s1380_s26  ;;  %17 = sbr.rel (!%p15_p10) target bundleno = 4 (0x4), region = 95 }
 0x4a7   :  { %837 = vsyncpa [#allocation6], 1 }
 0x4a8   :  { %839 = vsyncpa [#allocation6 + $0x1], 1 }

</bundles_post_ra>
